<compile_context>
chip_gen: v5e
topology: v5e:2x2
jax: 0.10.0
libtpu: 0.0.40
codegen_flags: <defaults>
</compile_context>

<pallas_src>
import jax
import jax.numpy as jnp
from jax.experimental import pallas as pl
from jax.experimental.pallas import tpu as pltpu


def _lin(x_bf16, w_bf16_ref, b_f32_ref, relu):
    """y = x @ W + b with bf16 MXU inputs and f32 accumulation / elementwise."""
    y = jnp.dot(x_bf16, w_bf16_ref[...], preferred_element_type=jnp.float32) + b_f32_ref[...]
    return jnp.maximum(y, 0.0) if relu else y


def mlp_kernel(x1_ref, x2_ref, x34_ref,
               w1a_ref, b1a_ref, w1b_ref, b1b_ref,
               w2a_ref, b2a_ref, w2b_ref, b2b_ref,
               w34_ref, b34_ref,
               wf1a_ref, wf1b_ref, wf1c_ref, bf1_ref,
               wf2_ref, bf2_ref,
               out_ref):
    bf16 = jnp.bfloat16
    # branch m1: Linear(dim1,1024) -> ReLU -> Dropout(id) -> Linear(1024,128) -> ReLU
    h1 = _lin(x1_ref[...], w1a_ref, b1a_ref, relu=True)
    h1 = _lin(h1.astype(bf16), w1b_ref, b1b_ref, relu=True)
    # branch m2: Linear(dim2,1024) -> ReLU -> Dropout(id) -> Linear(1024,128) -> ReLU
    h2 = _lin(x2_ref[...], w2a_ref, b2a_ref, relu=True)
    h2 = _lin(h2.astype(bf16), w2b_ref, b2b_ref, relu=True)
    # branches m3+m4 fused: block-diagonal Linear(dim3+dim4, 64) -> ReLU
    h34 = _lin(x34_ref[...], w34_ref, b34_ref, relu=True)
    # final head stage 1: Linear(320,64)+ReLU as a sum of three matmuls (no concatenate)
    h = (jnp.dot(h1.astype(bf16), wf1a_ref[...], preferred_element_type=jnp.float32)
         + jnp.dot(h2.astype(bf16), wf1b_ref[...], preferred_element_type=jnp.float32)
         + jnp.dot(h34.astype(bf16), wf1c_ref[...], preferred_element_type=jnp.float32)
         + bf1_ref[...])
    h = jnp.maximum(h, 0.0)
    # final head stage 2: Linear(64,1) as VPU mul + row reduction (avoids N=1 MXU pass)
    out_ref[...] = jnp.sum(h * wf2_ref[...], axis=1, keepdims=True) + bf2_ref[...]


def pack_params(p):
    """One-time repack for the kernel: bf16 weights, fused m3/m4 weight, split wf1."""
    bf16 = jnp.bfloat16
    dim3 = p["w3"].shape[0]
    dim4 = p["w4"].shape[0]
    # block-diagonal fusion of the two tiny branches: (dim3+dim4, 64)
    w34 = jnp.zeros((dim3 + dim4, 64), jnp.float32)
    w34 = w34.at[:dim3, :32].set(p["w3"]).at[dim3:, 32:].set(p["w4"])
    b34 = jnp.concatenate([p["b3"], p["b4"]], axis=1)            # (1, 64)
    wf1 = p["wf1"]                                               # (320, 64)
    return {
        "w1a": p["w1a"].astype(bf16), "b1a": p["b1a"],
        "w1b": p["w1b"].astype(bf16), "b1b": p["b1b"],
        "w2a": p["w2a"].astype(bf16), "b2a": p["b2a"],
        "w2b": p["w2b"].astype(bf16), "b2b": p["b2b"],
        "w34": w34.astype(bf16),      "b34": b34,
        "wf1a": wf1[:128].astype(bf16),      # multiplies h1 (128 features)
        "wf1b": wf1[128:256].astype(bf16),   # multiplies h2 (128 features)
        "wf1c": wf1[256:].astype(bf16),      # multiplies h34 (64 features)
        "bf1": p["bf1"],
        "wf2": p["wf2"].T,                   # (1, 64) f32 row for VPU mul + reduce
        "bf2": p["bf2"],                     # (1, 1) f32
    }


@jax.jit
def mlp_forward(x1, x2, x3, x4, pp):
    B = x1.shape[0]
    bf16 = jnp.bfloat16
    x34 = jnp.concatenate([x3, x4], axis=1)
    args = (x1.astype(bf16), x2.astype(bf16), x34.astype(bf16),
            pp["w1a"], pp["b1a"], pp["w1b"], pp["b1b"],
            pp["w2a"], pp["b2a"], pp["w2b"], pp["b2b"],
            pp["w34"], pp["b34"],
            pp["wf1a"], pp["wf1b"], pp["wf1c"], pp["bf1"],
            pp["wf2"], pp["bf2"])
    # Small problem: single grid point, full-array blocks fully resident in VMEM.
    return pl.pallas_call(
        mlp_kernel,
        out_shape=jax.ShapeDtypeStruct((B, 1), jnp.float32),
        in_specs=[pl.BlockSpec(memory_space=pltpu.MemorySpace.VMEM)] * len(args),
        out_specs=pl.BlockSpec(memory_space=pltpu.MemorySpace.VMEM),
    )(*args)


def init_params(key, dim1, dim2, dim3, dim4):
    """Deterministic synthetic parameters (shapes match nn.Linear layers, transposed)."""
    def lin_init(k, fan_in, fan_out):
        kw, kb = jax.random.split(k)
        bound = 1.0 / jnp.sqrt(fan_in)
        w = jax.random.uniform(kw, (fan_in, fan_out), jnp.float32, -bound, bound)
        b = jax.random.uniform(kb, (1, fan_out), jnp.float32, -bound, bound)
        return w, b

    ks = jax.random.split(key, 8)
    p = {}
    p["w1a"], p["b1a"] = lin_init(ks[0], dim1, 1024)
    p["w1b"], p["b1b"] = lin_init(ks[1], 1024, 128)
    p["w2a"], p["b2a"] = lin_init(ks[2], dim2, 1024)
    p["w2b"], p["b2b"] = lin_init(ks[3], 1024, 128)
    p["w3"],  p["b3"]  = lin_init(ks[4], dim3, 32)
    p["w4"],  p["b4"]  = lin_init(ks[5], dim4, 32)
    p["wf1"], p["bf1"] = lin_init(ks[6], 128 + 128 + 32 + 32, 64)
    p["wf2"], p["bf2"] = lin_init(ks[7], 64, 1)
    return p


def process_input(pred_dicts):
    """Plain-JAX glue mirroring MLP.process_input: flatten + stack per batch element."""
    x1 = jnp.stack([d["loc_row"].reshape(-1) for d in pred_dicts], axis=0)
    x2 = jnp.stack([d["loc_col"].reshape(-1) for d in pred_dicts], axis=0)
    x3 = jnp.stack([d["exist_row"].reshape(-1) for d in pred_dicts], axis=0)
    x4 = jnp.stack([d["exist_col"].reshape(-1) for d in pred_dicts], axis=0)
    return x1, x2, x3, x4


if __name__ == "__main__":
    # Small but structure-consistent configuration of the module:
    num_grid_row, num_cls_row, num_lane_on_row = 4, 8, 4
    num_grid_col, num_cls_col, num_lane_on_col = 4, 8, 4
    dim1 = num_grid_row * num_cls_row * num_lane_on_row   # 128
    dim2 = num_grid_col * num_cls_col * num_lane_on_col   # 128
    dim3 = 2 * num_cls_row * num_lane_on_row               # 64
    dim4 = 2 * num_cls_col * num_lane_on_col               # 64

    key = jax.random.PRNGKey(0)
    kp, kd = jax.random.split(key)
    params = init_params(kp, dim1, dim2, dim3, dim4)
    packed = pack_params(params)

    # batch of 2 prediction dicts (mirrors the list-of-dicts input of process_input)
    B = 2
    kds = jax.random.split(kd, 4 * B)
    pred_dicts = []
    for b in range(B):
        pred_dicts.append({
            "loc_row":   jax.random.normal(kds[4 * b + 0], (num_grid_row, num_cls_row, num_lane_on_row), jnp.float32),
            "loc_col":   jax.random.normal(kds[4 * b + 1], (num_grid_col, num_cls_col, num_lane_on_col), jnp.float32),
            "exist_row": jax.random.normal(kds[4 * b + 2], (2, num_cls_row, num_lane_on_row), jnp.float32),
            "exist_col": jax.random.normal(kds[4 * b + 3], (2, num_cls_col, num_lane_on_col), jnp.float32),
        })

    x1, x2, x3, x4 = process_input(pred_dicts)
    out = mlp_forward(x1, x2, x3, x4, packed)
    jax.block_until_ready(out)

    # reference check in plain JAX using the same bf16-weight / f32-accumulate math
    def ref(x1, x2, x3, x4, p):
        bf16 = jnp.bfloat16
        def lin(x, w, b, relu=True):
            y = jnp.dot(x.astype(bf16), w.astype(bf16), preferred_element_type=jnp.float32) + b
            return jnp.maximum(y, 0.0) if relu else y
        h1 = lin(lin(x1, p["w1a"], p["b1a"]), p["w1b"], p["b1b"])
        h2 = lin(lin(x2, p["w2a"], p["b2a"]), p["w2b"], p["b2b"])
        h3 = lin(x3, p["w3"], p["b3"])
        h4 = lin(x4, p["w4"], p["b4"])
        h = jnp.concatenate([h1, h2, h3, h4], axis=1)
        h = lin(h, p["wf1"], p["bf1"])
        return h @ p["wf2"] + p["bf2"]

    expected = ref(x1, x2, x3, x4, params)
    assert out.shape == (B, 1)
    assert jnp.allclose(out, expected, atol=2e-2, rtol=2e-2), (out, expected)
    print("KERNEL_OK")
</pallas_src>

<mosaic_0001>
module attributes {stable_mosaic.version = 11 : i64} {
  func.func @mlp_kernel(%arg0: memref<2x128xbf16, #tpu.memory_space<vmem>>, %arg1: memref<2x128xbf16, #tpu.memory_space<vmem>>, %arg2: memref<2x128xbf16, #tpu.memory_space<vmem>>, %arg3: memref<128x1024xbf16, #tpu.memory_space<vmem>>, %arg4: memref<1x1024xf32, #tpu.memory_space<vmem>>, %arg5: memref<1024x128xbf16, #tpu.memory_space<vmem>>, %arg6: memref<1x128xf32, #tpu.memory_space<vmem>>, %arg7: memref<128x1024xbf16, #tpu.memory_space<vmem>>, %arg8: memref<1x1024xf32, #tpu.memory_space<vmem>>, %arg9: memref<1024x128xbf16, #tpu.memory_space<vmem>>, %arg10: memref<1x128xf32, #tpu.memory_space<vmem>>, %arg11: memref<128x64xbf16, #tpu.memory_space<vmem>>, %arg12: memref<1x64xf32, #tpu.memory_space<vmem>>, %arg13: memref<128x64xbf16, #tpu.memory_space<vmem>>, %arg14: memref<128x64xbf16, #tpu.memory_space<vmem>>, %arg15: memref<64x64xbf16, #tpu.memory_space<vmem>>, %arg16: memref<1x64xf32, #tpu.memory_space<vmem>>, %arg17: memref<1x64xf32, #tpu.memory_space<vmem>>, %arg18: memref<1x1xf32, #tpu.memory_space<vmem>>, %arg19: memref<2x1xf32, #tpu.memory_space<vmem>>) attributes {dimension_semantics = [], scalar_prefetch = 0 : i64, scratch_operands = 0 : i64, tpu.core_type = #tpu.core_type<tc>} {
    %c0 = arith.constant 0 : index
    %c0_0 = arith.constant 0 : index
    %0 = vector.load %arg0[%c0, %c0_0] : memref<2x128xbf16, #tpu.memory_space<vmem>>, vector<2x128xbf16>
    %c0_1 = arith.constant 0 : index
    %c0_2 = arith.constant 0 : index
    %1 = vector.load %arg3[%c0_1, %c0_2] : memref<128x1024xbf16, #tpu.memory_space<vmem>>, vector<128x1024xbf16>
    %cst = arith.constant dense<0.000000e+00> : vector<2x1024xf32>
    %2 = tpu.matmul %0, %1, %cst {dimension_numbers = #tpu.dot_dimension_numbers<[1], [0], [0], [1], [0, 0, 1, 1], [], []>} : vector<2x128xbf16>, vector<128x1024xbf16>, vector<2x1024xf32> -> vector<2x1024xf32>
    %c0_3 = arith.constant 0 : index
    %c0_4 = arith.constant 0 : index
    %3 = vector.load %arg4[%c0_3, %c0_4] : memref<1x1024xf32, #tpu.memory_space<vmem>>, vector<1x1024xf32>
    %4 = vector.broadcast %3 : vector<1x1024xf32> to vector<2x1024xf32>
    %5 = arith.addf %2, %4 : vector<2x1024xf32>
    %cst_5 = arith.constant 0.000000e+00 : f32
    %6 = vector.broadcast %cst_5 : f32 to vector<2x1024xf32>
    %7 = arith.maximumf %5, %6 : vector<2x1024xf32>
    %8 = arith.truncf %7 : vector<2x1024xf32> to vector<2x1024xbf16>
    %c0_6 = arith.constant 0 : index
    %c0_7 = arith.constant 0 : index
    %9 = vector.load %arg5[%c0_6, %c0_7] : memref<1024x128xbf16, #tpu.memory_space<vmem>>, vector<1024x128xbf16>
    %cst_8 = arith.constant dense<0.000000e+00> : vector<2x128xf32>
    %10 = tpu.matmul %8, %9, %cst_8 {dimension_numbers = #tpu.dot_dimension_numbers<[1], [0], [0], [1], [0, 0, 1, 1], [], []>} : vector<2x1024xbf16>, vector<1024x128xbf16>, vector<2x128xf32> -> vector<2x128xf32>
    %c0_9 = arith.constant 0 : index
    %c0_10 = arith.constant 0 : index
    %11 = vector.load %arg6[%c0_9, %c0_10] : memref<1x128xf32, #tpu.memory_space<vmem>>, vector<1x128xf32>
    %12 = vector.broadcast %11 : vector<1x128xf32> to vector<2x128xf32>
    %13 = arith.addf %10, %12 : vector<2x128xf32>
    %cst_11 = arith.constant 0.000000e+00 : f32
    %14 = vector.broadcast %cst_11 : f32 to vector<2x128xf32>
    %15 = arith.maximumf %13, %14 : vector<2x128xf32>
    %c0_12 = arith.constant 0 : index
    %c0_13 = arith.constant 0 : index
    %16 = vector.load %arg1[%c0_12, %c0_13] : memref<2x128xbf16, #tpu.memory_space<vmem>>, vector<2x128xbf16>
    %c0_14 = arith.constant 0 : index
    %c0_15 = arith.constant 0 : index
    %17 = vector.load %arg7[%c0_14, %c0_15] : memref<128x1024xbf16, #tpu.memory_space<vmem>>, vector<128x1024xbf16>
    %cst_16 = arith.constant dense<0.000000e+00> : vector<2x1024xf32>
    %18 = tpu.matmul %16, %17, %cst_16 {dimension_numbers = #tpu.dot_dimension_numbers<[1], [0], [0], [1], [0, 0, 1, 1], [], []>} : vector<2x128xbf16>, vector<128x1024xbf16>, vector<2x1024xf32> -> vector<2x1024xf32>
    %c0_17 = arith.constant 0 : index
    %c0_18 = arith.constant 0 : index
    %19 = vector.load %arg8[%c0_17, %c0_18] : memref<1x1024xf32, #tpu.memory_space<vmem>>, vector<1x1024xf32>
    %20 = vector.broadcast %19 : vector<1x1024xf32> to vector<2x1024xf32>
    %21 = arith.addf %18, %20 : vector<2x1024xf32>
    %cst_19 = arith.constant 0.000000e+00 : f32
    %22 = vector.broadcast %cst_19 : f32 to vector<2x1024xf32>
    %23 = arith.maximumf %21, %22 : vector<2x1024xf32>
    %24 = arith.truncf %23 : vector<2x1024xf32> to vector<2x1024xbf16>
    %c0_20 = arith.constant 0 : index
    %c0_21 = arith.constant 0 : index
    %25 = vector.load %arg9[%c0_20, %c0_21] : memref<1024x128xbf16, #tpu.memory_space<vmem>>, vector<1024x128xbf16>
    %cst_22 = arith.constant dense<0.000000e+00> : vector<2x128xf32>
    %26 = tpu.matmul %24, %25, %cst_22 {dimension_numbers = #tpu.dot_dimension_numbers<[1], [0], [0], [1], [0, 0, 1, 1], [], []>} : vector<2x1024xbf16>, vector<1024x128xbf16>, vector<2x128xf32> -> vector<2x128xf32>
    %c0_23 = arith.constant 0 : index
    %c0_24 = arith.constant 0 : index
    %27 = vector.load %arg10[%c0_23, %c0_24] : memref<1x128xf32, #tpu.memory_space<vmem>>, vector<1x128xf32>
    %28 = vector.broadcast %27 : vector<1x128xf32> to vector<2x128xf32>
    %29 = arith.addf %26, %28 : vector<2x128xf32>
    %cst_25 = arith.constant 0.000000e+00 : f32
    %30 = vector.broadcast %cst_25 : f32 to vector<2x128xf32>
    %31 = arith.maximumf %29, %30 : vector<2x128xf32>
    %c0_26 = arith.constant 0 : index
    %c0_27 = arith.constant 0 : index
    %32 = vector.load %arg2[%c0_26, %c0_27] : memref<2x128xbf16, #tpu.memory_space<vmem>>, vector<2x128xbf16>
    %c0_28 = arith.constant 0 : index
    %c0_29 = arith.constant 0 : index
    %33 = vector.load %arg11[%c0_28, %c0_29] : memref<128x64xbf16, #tpu.memory_space<vmem>>, vector<128x64xbf16>
    %cst_30 = arith.constant dense<0.000000e+00> : vector<2x64xf32>
    %34 = tpu.matmul %32, %33, %cst_30 {dimension_numbers = #tpu.dot_dimension_numbers<[1], [0], [0], [1], [0, 0, 1, 1], [], []>} : vector<2x128xbf16>, vector<128x64xbf16>, vector<2x64xf32> -> vector<2x64xf32>
    %c0_31 = arith.constant 0 : index
    %c0_32 = arith.constant 0 : index
    %35 = vector.load %arg12[%c0_31, %c0_32] : memref<1x64xf32, #tpu.memory_space<vmem>>, vector<1x64xf32>
    %36 = vector.broadcast %35 : vector<1x64xf32> to vector<2x64xf32>
    %37 = arith.addf %34, %36 : vector<2x64xf32>
    %cst_33 = arith.constant 0.000000e+00 : f32
    %38 = vector.broadcast %cst_33 : f32 to vector<2x64xf32>
    %39 = arith.maximumf %37, %38 : vector<2x64xf32>
    %40 = arith.truncf %15 : vector<2x128xf32> to vector<2x128xbf16>
    %c0_34 = arith.constant 0 : index
    %c0_35 = arith.constant 0 : index
    %41 = vector.load %arg13[%c0_34, %c0_35] : memref<128x64xbf16, #tpu.memory_space<vmem>>, vector<128x64xbf16>
    %cst_36 = arith.constant dense<0.000000e+00> : vector<2x64xf32>
    %42 = tpu.matmul %40, %41, %cst_36 {dimension_numbers = #tpu.dot_dimension_numbers<[1], [0], [0], [1], [0, 0, 1, 1], [], []>} : vector<2x128xbf16>, vector<128x64xbf16>, vector<2x64xf32> -> vector<2x64xf32>
    %43 = arith.truncf %31 : vector<2x128xf32> to vector<2x128xbf16>
    %c0_37 = arith.constant 0 : index
    %c0_38 = arith.constant 0 : index
    %44 = vector.load %arg14[%c0_37, %c0_38] : memref<128x64xbf16, #tpu.memory_space<vmem>>, vector<128x64xbf16>
    %cst_39 = arith.constant dense<0.000000e+00> : vector<2x64xf32>
    %45 = tpu.matmul %43, %44, %cst_39 {dimension_numbers = #tpu.dot_dimension_numbers<[1], [0], [0], [1], [0, 0, 1, 1], [], []>} : vector<2x128xbf16>, vector<128x64xbf16>, vector<2x64xf32> -> vector<2x64xf32>
    %46 = arith.addf %42, %45 : vector<2x64xf32>
    %47 = arith.truncf %39 : vector<2x64xf32> to vector<2x64xbf16>
    %c0_40 = arith.constant 0 : index
    %c0_41 = arith.constant 0 : index
    %48 = vector.load %arg15[%c0_40, %c0_41] : memref<64x64xbf16, #tpu.memory_space<vmem>>, vector<64x64xbf16>
    %cst_42 = arith.constant dense<0.000000e+00> : vector<2x64xf32>
    %49 = tpu.matmul %47, %48, %cst_42 {dimension_numbers = #tpu.dot_dimension_numbers<[1], [0], [0], [1], [0, 0, 1, 1], [], []>} : vector<2x64xbf16>, vector<64x64xbf16>, vector<2x64xf32> -> vector<2x64xf32>
    %50 = arith.addf %46, %49 : vector<2x64xf32>
    %c0_43 = arith.constant 0 : index
    %c0_44 = arith.constant 0 : index
    %51 = vector.load %arg16[%c0_43, %c0_44] : memref<1x64xf32, #tpu.memory_space<vmem>>, vector<1x64xf32>
    %52 = vector.broadcast %51 : vector<1x64xf32> to vector<2x64xf32>
    %53 = arith.addf %50, %52 : vector<2x64xf32>
    %cst_45 = arith.constant 0.000000e+00 : f32
    %54 = vector.broadcast %cst_45 : f32 to vector<2x64xf32>
    %55 = arith.maximumf %53, %54 : vector<2x64xf32>
    %c0_46 = arith.constant 0 : index
    %c0_47 = arith.constant 0 : index
    %56 = vector.load %arg17[%c0_46, %c0_47] : memref<1x64xf32, #tpu.memory_space<vmem>>, vector<1x64xf32>
    %57 = vector.broadcast %56 : vector<1x64xf32> to vector<2x64xf32>
    %58 = arith.mulf %55, %57 : vector<2x64xf32>
    %cst_48 = arith.constant dense<0.000000e+00> : vector<2xf32>
    %59 = vector.multi_reduction <add>, %58, %cst_48 [1] : vector<2x64xf32> to vector<2xf32>
    %60 = vector.shape_cast %59 : vector<2xf32> to vector<2x1xf32>
    %c0_49 = arith.constant 0 : index
    %c0_50 = arith.constant 0 : index
    %61 = vector.load %arg18[%c0_49, %c0_50] : memref<1x1xf32, #tpu.memory_space<vmem>>, vector<1x1xf32>
    %62 = vector.broadcast %61 : vector<1x1xf32> to vector<2x1xf32>
    %63 = arith.addf %60, %62 : vector<2x1xf32>
    %c0_51 = arith.constant 0 : index
    %c0_52 = arith.constant 0 : index
    %64 = vector.load %arg19[%c0_51, %c0_52] : memref<2x1xf32, #tpu.memory_space<vmem>>, vector<2x1xf32>
    tpu.vector_store %arg19[%c0_51, %c0_52], %63 {strides = array<i32>} : memref<2x1xf32, #tpu.memory_space<vmem>>, vector<2x1xf32>,
    return
  }
}

</mosaic_0001>

<bundles_post_ra>
// kernel: mlp_forward.1
= control target key start
LH: loop header
LB: loop body
LE: loop exit
PB: predicated region body
PF: predicated region fallthrough
CT: control target
= control target key end

     0   :  { %s4567_s0 = inlined_call_operand.vmem [shape: bf16[2,128], index: 0, kind: input, shape index: {}]   ;;  %s4568_s1 = inlined_call_operand.vmem [shape: bf16[2,128], index: 1, kind: input, shape index: {}]   ;;  %s4569_s2 = inlined_call_operand.vmem [shape: bf16[2,128], index: 2, kind: input, shape index: {}]   ;;  %s4570_s3 = inlined_call_operand.hbm [shape: bf16[128,1024], index: 3, kind: input, shape index: {}]   ;;  %s4571_s4 = inlined_call_operand.vmem [shape: f32[1,1024], index: 4, kind: input, shape index: {}]   ;;  %s4572_s5 = inlined_call_operand.hbm [shape: bf16[1024,128], index: 5, kind: input, shape index: {}]   ;;  %s4573_s6 = inlined_call_operand.vmem [shape: f32[1,128], index: 6, kind: input, shape index: {}]   ;;  %s4574_s7 = inlined_call_operand.hbm [shape: bf16[128,1024], index: 7, kind: input, shape index: {}]   ;;  %s4575_s8 = inlined_call_operand.vmem [shape: f32[1,1024], index: 8, kind: input, shape index: {}]   ;;  %s4576_s9 = inlined_call_operand.hbm [shape: bf16[1024,128], index: 9, kind: input, shape index: {}]   ;;  %s4577_s10 = inlined_call_operand.vmem [shape: f32[1,128], index: 10, kind: input, shape index: {}]   ;;  %s4578_s11 = inlined_call_operand.vmem [shape: bf16[128,64], index: 11, kind: input, shape index: {}]   ;;  %s4579_s12 = inlined_call_operand.vmem [shape: f32[1,64], index: 12, kind: input, shape index: {}]   ;;  %s4580_s13 = inlined_call_operand.vmem [shape: bf16[128,64], index: 13, kind: input, shape index: {}]   ;;  %s4581_s14 = inlined_call_operand.vmem [shape: bf16[128,64], index: 14, kind: input, shape index: {}]   ;;  %s4582_s15 = inlined_call_operand.vmem [shape: bf16[64,64], index: 15, kind: input, shape index: {}]   ;;  %s4583_s16 = inlined_call_operand.vmem [shape: f32[1,64], index: 16, kind: input, shape index: {}]   ;;  %s4584_s17 = inlined_call_operand.vmem [shape: f32[1,64], index: 17, kind: input, shape index: {}]   ;;  %s4585_s18 = inlined_call_operand.<no memory space> [shape: f32[1,1], index: 18, kind: input, shape index: {}]   ;;  %s4586_s19 = inlined_call_operand.vmem [shape: f32[2,1], index: 19, kind: output, shape index: {}]  }
   0x1   :  { %4587 = sst [smem:[#allocation13_spill]] %s4567_s0  ;;  %v24_v0 = vstv %s4585_s18 }
   0x2   :  { %4588 = sst [smem:[#allocation14_spill]] %s4568_s1  ;;  %25 = vst [vmem:[#allocation2] sm:$0x1] %v24_v0 }
   0x3   :  { %4589 = sst [smem:[#allocation15_spill]] %s4569_s2 }
   0x4   :  { %4590 = sst [smem:[#allocation16_spill]] %s4570_s3 }
   0x5   :  { %26 = vsyncpa [#allocation4], 0 }
   0x6   :  { %27 = vsyncpa [#allocation6], 0  ;;  %s54_s1 = sshll.u32 %s4572_s5, 4  ;;  %s55_s1 = int_to_ptr.hbm [resolvable:$true] %s54_s1 }
   0x7   :  { %28 = vsyncpa [#allocation9], 0  ;;  %s4272_s22 = smov [#allocation5]   ;;  %s4591_s25 = sld [smem:[#allocation16_spill]] }
   0x8   :  { %s56_s2 = sshll.u32 %s4272_s22, 4  ;;  %s4273_s26 = smov 64   ;;  %s57_s2 = int_to_ptr.vmem [resolvable:$true] %s56_s2 }
   0x9   :  { %s4274_s27 = smov 4   ;;  %s4275_s18 = smov [#allocation3]  }
   0xa   :  { %62 = dma.hbm_to_vmem [thread:$0]  %s55_s1, 8192, %s57_s2, [#allocation6], %s4273_s26, %s4273_s26, %s4274_s27  }
   0xb   :  { %s41_s28 = sshll.u32 %s4275_s18, 4  ;;  %s4276_s29 = smov 512   ;;  %s42_s28 = int_to_ptr.vmem [resolvable:$true] %s41_s28 }
   0xc   :  { %s4277_s0 = smov 32   ;;  %s69_s20 = sshll.u32 %s4574_s7, 4  ;;  %s70_s20 = int_to_ptr.hbm [resolvable:$true] %s69_s20 }
   0xd   :  { %s39_s3 = sshll.u32 %s4591_s25, 4  ;;  %s4278_s21 = smov [#allocation7]   ;;  %s40_s3 = int_to_ptr.hbm [resolvable:$true] %s39_s3 }
   0xe   :  { %47 = dma.hbm_to_vmem [thread:$0]  %s40_s3, 8192, %s42_s28, [#allocation4], %s4276_s29, %s4276_s29, %s4277_s0  }
   0xf   :  { %s71_s22 = sshll.u32 %s4278_s21, 4  ;;  %s84_s25 = sshll.u32 %s4576_s9, 4  ;;  %s72_s22 = int_to_ptr.vmem [resolvable:$true] %s71_s22  ;;  %s85_s25 = int_to_ptr.hbm [resolvable:$true] %s84_s25 }
  0x10   :  { %77 = dma.hbm_to_vmem [thread:$0]  %s70_s20, 8192, %s72_s22, [#allocation6], %s4276_s29, %s4276_s29, %s4277_s0  }
  0x11   :  { %s4279_s1 = smov [#allocation8]  }
  0x12   :  { %s86_s2 = sshll.u32 %s4279_s1, 4  ;;  %s87_s2 = int_to_ptr.vmem [resolvable:$true] %s86_s2 }
  0x13   :  { %92 = dma.hbm_to_vmem [thread:$0]  %s85_s25, 8192, %s87_s2, [#allocation9], %s4273_s26, %s4273_s26, %s4274_s27  }
  0x14   :  { %4266 = dma.done.wait [#allocation4], 8192  }
  0x15   :  { %4267 = vsyncadd [#allocation4], 4294959104 }
  0x16   :  { %4268 = dma.done.wait [#allocation6], 16384  }
  0x17   :  { %4269 = vsyncadd [#allocation6], 4294950912 }
  0x18   :  { %4270 = dma.done.wait [#allocation9], 8192  }
  0x19   :  { %4271 = vsyncadd [#allocation9], 4294959104  ;;  %v2961_v1 = vld [vmem:[#allocation3 + $0x1c0] sm:$0xf]  ;;  %v2969_v3 = vld [vmem:[#allocation3 + $0x1c8] sm:$0xf] }
  0x1a   :  { %v3932_v2 = vld [vmem:[#allocation3 + $0x1dc] sm:$0xf0]  ;;  %v3933_v5 = vld [vmem:[#allocation3 + $0x1e4] sm:$0xf0]  ;;  %v3929_v6 = vld [vmem:[#allocation3 + $0x1cc] sm:$0xf] }
  0x1b   :  { %v2962_v4 = vor.u32 %v3932_v2, %v2961_v1  ;;  %v2971_v7 = vld [vmem:[#allocation3 + $0x1e8] sm:$0xf0]  ;;  %v2970_v8 = vor.u32 %v3933_v5, %v2969_v3  ;;  %v3928_v10 = vld [vmem:[#allocation3 + $0x1c4] sm:$0xf]  ;;  %v2929_v12 = vld [vmem:[#allocation3 + $0x180] sm:$0xf] }
  0x1c   :  { %v2974_v9 = vor.u32 %v3929_v6, %v2971_v7  ;;  %v2963_v11 = vld [vmem:[#allocation3 + $0x1e0] sm:$0xf0]  ;;  %v3924_v14 = vld [vmem:[#allocation3 + $0x19c] sm:$0xf0]  ;;  %v2937_v15 = vld [vmem:[#allocation3 + $0x188] sm:$0xf] }
  0x1d   :  { %531 = vmatpush.bf16.msra.mxu0 %v2962_v4  ;;  %v2966_v13 = vor.u32 %v3928_v10, %v2963_v11  ;;  %v3925_v16 = vld [vmem:[#allocation3 + $0x1a4] sm:$0xf0]  ;;  %557 = vmatpush.bf16.msra.mxu2 %v2970_v8  ;;  %v2930_v17 = vor.u32 %v3924_v14, %v2929_v12  ;;  %v3921_v19 = vld [vmem:[#allocation3 + $0x18c] sm:$0xf]  ;;  %v3920_v21 = vld [vmem:[#allocation3 + $0x184] sm:$0xf] }
  0x1e   :  { %570 = vmatpush.bf16.msra.mxu3 %v2974_v9  ;;  %v2938_v18 = vor.u32 %v3925_v16, %v2937_v15  ;;  %v2939_v20 = vld [vmem:[#allocation3 + $0x1a8] sm:$0xf0]  ;;  %v2931_v23 = vld [vmem:[#allocation3 + $0x1a0] sm:$0xf0]  ;;  %v2897_v24 = vld [vmem:[#allocation3 + $0x140] sm:$0xf] }
  0x1f   :  { %544 = vmatpush.bf16.msra.mxu1 %v2966_v13  ;;  %v2942_v22 = vor.u32 %v3921_v19, %v2939_v20  ;;  %v3916_v25 = vld [vmem:[#allocation3 + $0x15c] sm:$0xf0]  ;;  %v2934_v26 = vor.u32 %v3920_v21, %v2931_v23  ;;  %v2905_v27 = vld [vmem:[#allocation3 + $0x148] sm:$0xf]  ;;  %v3913_v29 = vld [vmem:[#allocation3 + $0x14c] sm:$0xf] }
  0x20   :  { %v3917_v28 = vld [vmem:[#allocation3 + $0x164] sm:$0xf0]  ;;  %v2898_v30 = vor.u32 %v3916_v25, %v2897_v24  ;;  %v2907_v31 = vld [vmem:[#allocation3 + $0x168] sm:$0xf0]  ;;  %v3912_v32 = vld [vmem:[#allocation3 + $0x144] sm:$0xf] }
  0x21   :  { %532 = vmatpush.bf16.msra.mxu0 %v2930_v17  ;;  %v2899_v33 = vld [vmem:[#allocation3 + $0x160] sm:$0xf0]  ;;  %558 = vmatpush.bf16.msra.mxu2 %v2938_v18  ;;  %v2906_v34 = vor.u32 %v3917_v28, %v2905_v27  ;;  %v2910_v35 = vor.u32 %v3913_v29, %v2907_v31  ;;  %v2865_v36 = vld [vmem:[#allocation3 + $0x100] sm:$0xf]  ;;  %v2873_v38 = vld [vmem:[#allocation3 + $0x108] sm:$0xf] }
  0x22   :  { %571 = vmatpush.bf16.msra.mxu3 %v2942_v22  ;;  %v3908_v37 = vld [vmem:[#allocation3 + $0x11c] sm:$0xf0]  ;;  %v2902_v39 = vor.u32 %v3912_v32, %v2899_v33  ;;  %v3909_v40 = vld [vmem:[#allocation3 + $0x124] sm:$0xf0]  ;;  %v3905_v41 = vld [vmem:[#allocation3 + $0x10c] sm:$0xf] }
  0x23   :  { %545 = vmatpush.bf16.msra.mxu1 %v2934_v26  ;;  %v2875_v42 = vld [vmem:[#allocation3 + $0x128] sm:$0xf0]  ;;  %v3904_v43 = vld [vmem:[#allocation3 + $0x104] sm:$0xf]  ;;  %v2866_v45 = vor.u32 %v3908_v37, %v2865_v36  ;;  %v2874_v46 = vor.u32 %v3909_v40, %v2873_v38  ;;  %v2833_v48 = vld [vmem:[#allocation3 + $0xc0] sm:$0xf] }
  0x24   :  { %v2867_v44 = vld [vmem:[#allocation3 + $0x120] sm:$0xf0]  ;;  %v2878_v47 = vor.u32 %v3905_v41, %v2875_v42  ;;  %v3900_v49 = vld [vmem:[#allocation3 + $0xdc] sm:$0xf0]  ;;  %v2841_v50 = vld [vmem:[#allocation3 + $0xc8] sm:$0xf] }
  0x25   :  { %533 = vmatpush.bf16.msra.mxu0 %v2898_v30  ;;  %559 = vmatpush.bf16.msra.mxu2 %v2906_v34  ;;  %v2870_v51 = vor.u32 %v3904_v43, %v2867_v44  ;;  %v3901_v52 = vld [vmem:[#allocation3 + $0xe4] sm:$0xf0]  ;;  %v3897_v53 = vld [vmem:[#allocation3 + $0xcc] sm:$0xf]  ;;  %v3896_v55 = vld [vmem:[#allocation3 + $0xc4] sm:$0xf]  ;;  %v2834_v57 = vor.u32 %v3900_v49, %v2833_v48 }
  0x26   :  { %572 = vmatpush.bf16.msra.mxu3 %v2910_v35  ;;  %v2843_v54 = vld [vmem:[#allocation3 + $0xe8] sm:$0xf0]  ;;  %v2835_v56 = vld [vmem:[#allocation3 + $0xe0] sm:$0xf0]  ;;  %v2842_v58 = vor.u32 %v3901_v52, %v2841_v50  ;;  %v2801_v60 = vld [vmem:[#allocation3 + $0x80] sm:$0xf] }
  0x27   :  { %546 = vmatpush.bf16.msra.mxu1 %v2902_v39  ;;  %v2846_v59 = vor.u32 %v3897_v53, %v2843_v54  ;;  %v3892_v61 = vld [vmem:[#allocation3 + $0x9c] sm:$0xf0]  ;;  %v2809_v62 = vld [vmem:[#allocation3 + $0x88] sm:$0xf]  ;;  %v2838_v63 = vor.u32 %v3896_v55, %v2835_v56  ;;  %v3889_v1 = vld [vmem:[#allocation3 + $0x8c] sm:$0xf] }
  0x28   :  { %v3893_v0 = vld [vmem:[#allocation3 + $0xa4] sm:$0xf0]  ;;  %v2811_v2 = vld [vmem:[#allocation3 + $0xa8] sm:$0xf0]  ;;  %v3888_v3 = vld [vmem:[#allocation3 + $0x84] sm:$0xf]  ;;  %v2802_v5 = vor.u32 %v3892_v61, %v2801_v60 }
  0x29   :  { %534 = vmatpush.bf16.msra.mxu0 %v2866_v45  ;;  %560 = vmatpush.bf16.msra.mxu2 %v2874_v46  ;;  %v2803_v4 = vld [vmem:[#allocation3 + $0xa0] sm:$0xf0]  ;;  %v2810_v6 = vor.u32 %v3893_v0, %v2809_v62  ;;  %v2814_v7 = vor.u32 %v3889_v1, %v2811_v2  ;;  %v2769_v8 = vld [vmem:[#allocation3 + $0x40] sm:$0xf]  ;;  %v2777_v10 = vld [vmem:[#allocation3 + $0x48] sm:$0xf] }
  0x2a   :  { %573 = vmatpush.bf16.msra.mxu3 %v2878_v47  ;;  %v3884_v9 = vld [vmem:[#allocation3 + $0x5c] sm:$0xf0]  ;;  %v2806_v11 = vor.u32 %v3888_v3, %v2803_v4  ;;  %v3885_v12 = vld [vmem:[#allocation3 + $0x64] sm:$0xf0]  ;;  %v3881_v13 = vld [vmem:[#allocation3 + $0x4c] sm:$0xf] }
  0x2b   :  { %547 = vmatpush.bf16.msra.mxu1 %v2870_v51  ;;  %v2779_v14 = vld [vmem:[#allocation3 + $0x68] sm:$0xf0]  ;;  %v3880_v15 = vld [vmem:[#allocation3 + $0x44] sm:$0xf]  ;;  %v2770_v17 = vor.u32 %v3884_v9, %v2769_v8  ;;  %v2737_v18 = vld [vmem:[#allocation3] sm:$0xf]  ;;  %v2778_v20 = vor.u32 %v3885_v12, %v2777_v10 }
  0x2c   :  { %v2771_v16 = vld [vmem:[#allocation3 + $0x60] sm:$0xf0]  ;;  %v3876_v19 = vld [vmem:[#allocation3 + $0x1c] sm:$0xf0]  ;;  %v2782_v21 = vor.u32 %v3881_v13, %v2779_v14  ;;  %v2745_v22 = vld [vmem:[#allocation3 + $0x8] sm:$0xf] }
  0x2d   :  { %535 = vmatpush.bf16.msra.mxu0 %v2834_v57  ;;  %561 = vmatpush.bf16.msra.mxu2 %v2842_v58  ;;  %v3877_v23 = vld [vmem:[#allocation3 + $0x24] sm:$0xf0]  ;;  %v3873_v24 = vld [vmem:[#allocation3 + $0xc] sm:$0xf]  ;;  %v2774_v25 = vor.u32 %v3880_v15, %v2771_v16  ;;  %v2977_v27 = vld [vmem:[#allocation3 + $0x1d0] sm:$0xf]  ;;  %v2738_v32 = vor.u32 %v3876_v19, %v2737_v18 }
  0x2e   :  { %574 = vmatpush.bf16.msra.mxu3 %v2846_v59  ;;  %v2747_v26 = vld [vmem:[#allocation3 + $0x28] sm:$0xf0]  ;;  %v3934_v28 = vld [vmem:[#allocation3 + $0x1ec] sm:$0xf0]  ;;  %v2985_v29 = vld [vmem:[#allocation3 + $0x1d8] sm:$0xf]  ;;  %v2746_v36 = vor.u32 %v3877_v23, %v2745_v22 }
  0x2f   :  { %548 = vmatpush.bf16.msra.mxu1 %v2838_v63  ;;  %v3935_v30 = vld [vmem:[#allocation3 + $0x1f4] sm:$0xf0]  ;;  %v3931_v31 = vld [vmem:[#allocation3 + $0x1dc] sm:$0xf]  ;;  %v3872_v34 = vld [vmem:[#allocation3 + $0x4] sm:$0xf]  ;;  %v2750_v37 = vor.u32 %v3873_v24, %v2747_v26  ;;  %v2978_v38 = vor.u32 %v3934_v28, %v2977_v27 }
  0x30   :  { %v2987_v33 = vld [vmem:[#allocation3 + $0x1f8] sm:$0xf0]  ;;  %v2739_v35 = vld [vmem:[#allocation3 + $0x20] sm:$0xf0]  ;;  %v2986_v39 = vor.u32 %v3935_v30, %v2985_v29  ;;  %v3930_v40 = vld [vmem:[#allocation3 + $0x1d4] sm:$0xf] }
  0x31   :  { %536 = vmatpush.bf16.msra.mxu0 %v2802_v5  ;;  %562 = vmatpush.bf16.msra.mxu2 %v2810_v6  ;;  %v2979_v41 = vld [vmem:[#allocation3 + $0x1f0] sm:$0xf0]  ;;  %v2945_v42 = vld [vmem:[#allocation3 + $0x190] sm:$0xf]  ;;  %v2990_v43 = vor.u32 %v3931_v31, %v2987_v33  ;;  %v2742_v44 = vor.u32 %v3872_v34, %v2739_v35  ;;  %v2953_v46 = vld [vmem:[#allocation3 + $0x198] sm:$0xf] }
  0x32   :  { %575 = vmatpush.bf16.msra.mxu3 %v2814_v7  ;;  %v3926_v45 = vld [vmem:[#allocation3 + $0x1ac] sm:$0xf0]  ;;  %v3927_v47 = vld [vmem:[#allocation3 + $0x1b4] sm:$0xf0]  ;;  %v3923_v48 = vld [vmem:[#allocation3 + $0x19c] sm:$0xf]  ;;  %v2982_v51 = vor.u32 %v3930_v40, %v2979_v41 }
  0x33   :  { %549 = vmatpush.bf16.msra.mxu1 %v2806_v11  ;;  %v2955_v49 = vld [vmem:[#allocation3 + $0x1b8] sm:$0xf0]  ;;  %s4592_s3 = sld [smem:[#allocation13_spill]]  ;;  %v2946_v52 = vor.u32 %v3926_v45, %v2945_v42  ;;  %v2954_v53 = vor.u32 %v3927_v47, %v2953_v46  ;;  %v3922_v54 = vld [vmem:[#allocation3 + $0x194] sm:$0xf]  ;;  %vm2688_vm0 = vcmask 523264  }
  0x34   :  { %v2947_v55 = vld [vmem:[#allocation3 + $0x1b0] sm:$0xf0]  ;;  %v2913_v56 = vld [vmem:[#allocation3 + $0x150] sm:$0xf]  ;;  %v2958_v57 = vor.u32 %v3923_v48, %v2955_v49  ;;  %v2921_v59 = vld [vmem:[#allocation3 + $0x158] sm:$0xf] }
  0x35   :  { %537 = vmatpush.bf16.msra.mxu0 %v2770_v17  ;;  %563 = vmatpush.bf16.msra.mxu2 %v2778_v20  ;;  %v3918_v58 = vld [vmem:[#allocation3 + $0x16c] sm:$0xf0]  ;;  %v3919_v60 = vld [vmem:[#allocation3 + $0x174] sm:$0xf0]  ;;  %v3915_v61 = vld [vmem:[#allocation3 + $0x15c] sm:$0xf]  ;;  %v2950_v63 = vor.u32 %v3922_v54, %v2947_v55 }
  0x36   :  { %576 = vmatpush.bf16.msra.mxu3 %v2782_v21  ;;  %v2923_v62 = vld [vmem:[#allocation3 + $0x178] sm:$0xf0]  ;;  %v2914_v0 = vor.u32 %v3918_v58, %v2913_v56  ;;  %v2922_v1 = vor.u32 %v3919_v60, %v2921_v59  ;;  %v3914_v2 = vld [vmem:[#allocation3 + $0x154] sm:$0xf]  ;;  %v2881_v4 = vld [vmem:[#allocation3 + $0x110] sm:$0xf] }
  0x37   :  { %550 = vmatpush.bf16.msra.mxu1 %v2774_v25  ;;  %v2915_v3 = vld [vmem:[#allocation3 + $0x170] sm:$0xf0]  ;;  %v2926_v5 = vor.u32 %v3915_v61, %v2923_v62  ;;  %v3910_v6 = vld [vmem:[#allocation3 + $0x12c] sm:$0xf0]  ;;  %v2889_v7 = vld [vmem:[#allocation3 + $0x118] sm:$0xf] }
  0x38   :  { %v3911_v8 = vld [vmem:[#allocation3 + $0x134] sm:$0xf0]  ;;  %v3907_v9 = vld [vmem:[#allocation3 + $0x11c] sm:$0xf]  ;;  %v2918_v11 = vor.u32 %v3914_v2, %v2915_v3  ;;  %v2882_v12 = vor.u32 %v3910_v6, %v2881_v4  ;;  %v3906_v14 = vld [vmem:[#allocation3 + $0x114] sm:$0xf] }
  0x39   :  { %538 = vmatpush.bf16.msra.mxu0 %v2738_v32  ;;  %564 = vmatpush.bf16.msra.mxu2 %v2746_v36  ;;  %v4398_v50 = vld [vmem:[%s4592_s3] sm:$0x1]  ;;  %v2890_v13 = vor.u32 %v3911_v8, %v2889_v7  ;;  %v2883_v15 = vld [vmem:[#allocation3 + $0x130] sm:$0xf0]  ;;  %v2849_v16 = vld [vmem:[#allocation3 + $0xd0] sm:$0xf] }
  0x3a   :  { %577 = vmatpush.bf16.msra.mxu3 %v2750_v37  ;;  %v2891_v10 = vld [vmem:[#allocation3 + $0x138] sm:$0xf0]  ;;  %v3902_v18 = vld [vmem:[#allocation3 + $0xec] sm:$0xf0]  ;;  %v2857_v19 = vld [vmem:[#allocation3 + $0xd8] sm:$0xf]  ;;  %v2886_v23 = vor.u32 %v3906_v14, %v2883_v15 }
  0x3b   :  { %551 = vmatpush.bf16.msra.mxu1 %v2742_v44  ;;  %v2894_v17 = vor.u32 %v3907_v9, %v2891_v10  ;;  %v3903_v20 = vld [vmem:[#allocation3 + $0xf4] sm:$0xf0]  ;;  %v3899_v21 = vld [vmem:[#allocation3 + $0xdc] sm:$0xf]  ;;  %v3898_v24 = vld [vmem:[#allocation3 + $0xd4] sm:$0xf]  ;;  %v2850_v25 = vor.u32 %v3902_v18, %v2849_v16 }
  0x3c   :  { %539 = vmatmul.bf16.vlgmr.msra.gmra.mxu0 %v4398_v50  ;;  %565 = vmatmul.bf16.vlgmr.msra.gmra.mxu2 %v4398_v50  ;;  %v2859_v22 = vld [vmem:[#allocation3 + $0xf8] sm:$0xf0]  ;;  %v2858_v26 = vor.u32 %v3903_v20, %v2857_v19  ;;  %v2851_v27 = vld [vmem:[#allocation3 + $0xf0] sm:$0xf0]  ;;  %v2817_v28 = vld [vmem:[#allocation3 + $0x90] sm:$0xf] }
  0x3d   :  { %583 = vmatpush.bf16.msrb.mxu0 %v2978_v38  ;;  %609 = vmatpush.bf16.msrb.mxu2 %v2986_v39  ;;  %v3894_v29 = vld [vmem:[#allocation3 + $0xac] sm:$0xf0]  ;;  %v2862_v30 = vor.u32 %v3899_v21, %v2859_v22  ;;  %v2825_v31 = vld [vmem:[#allocation3 + $0x98] sm:$0xf]  ;;  %v3891_v33 = vld [vmem:[#allocation3 + $0x9c] sm:$0xf]  ;;  %v2854_v37 = vor.u32 %v3898_v24, %v2851_v27 }
  0x3e   :  { %622 = vmatpush.bf16.msrb.mxu3 %v2990_v43  ;;  %552 = vmatmul.bf16.vlgmr.msra.gmra.mxu1 %v4398_v50  ;;  %v3895_v32 = vld [vmem:[#allocation3 + $0xb4] sm:$0xf0]  ;;  %v2827_v34 = vld [vmem:[#allocation3 + $0xb8] sm:$0xf0]  ;;  %v3890_v35 = vld [vmem:[#allocation3 + $0x94] sm:$0xf]  ;;  %v2818_v40 = vor.u32 %v3894_v29, %v2817_v28 }
  0x3f   :  { %578 = vmatmul.bf16.vlgmr.msra.gmra.mxu3 %v4398_v50  ;;  %596 = vmatpush.bf16.msrb.mxu1 %v2982_v51  ;;  %v2819_v36 = vld [vmem:[#allocation3 + $0xb0] sm:$0xf0]  ;;  %v2785_v38 = vld [vmem:[#allocation3 + $0x50] sm:$0xf]  ;;  %v2826_v41 = vor.u32 %v3895_v32, %v2825_v31  ;;  %v2830_v42 = vor.u32 %v3891_v33, %v2827_v34  ;;  %v2793_v43 = vld [vmem:[#allocation3 + $0x58] sm:$0xf] }
  0x40   :  { %v3886_v39 = vld [vmem:[#allocation3 + $0x6c] sm:$0xf0]  ;;  %v3887_v44 = vld [vmem:[#allocation3 + $0x74] sm:$0xf0]  ;;  %v3883_v45 = vld [vmem:[#allocation3 + $0x5c] sm:$0xf]  ;;  %v2822_v47 = vor.u32 %v3890_v35, %v2819_v36 }
  0x41   :  { %584 = vmatpush.bf16.msrb.mxu0 %v2946_v52  ;;  %610 = vmatpush.bf16.msrb.mxu2 %v2954_v53  ;;  %v2795_v46 = vld [vmem:[#allocation3 + $0x78] sm:$0xf0]  ;;  %v2786_v48 = vor.u32 %v3886_v39, %v2785_v38  ;;  %v2794_v49 = vor.u32 %v3887_v44, %v2793_v43  ;;  %v3882_v51 = vld [vmem:[#allocation3 + $0x54] sm:$0xf]  ;;  %v2753_v53 = vld [vmem:[#allocation3 + $0x10] sm:$0xf] }
  0x42   :  { %623 = vmatpush.bf16.msrb.mxu3 %v2958_v57  ;;  %v2787_v52 = vld [vmem:[#allocation3 + $0x70] sm:$0xf0]  ;;  %v2798_v54 = vor.u32 %v3883_v45, %v2795_v46  ;;  %v3878_v55 = vld [vmem:[#allocation3 + $0x2c] sm:$0xf0]  ;;  %v2761_v56 = vld [vmem:[#allocation3 + $0x18] sm:$0xf] }
  0x43   :  { %597 = vmatpush.bf16.msrb.mxu1 %v2950_v63  ;;  %v3879_v57 = vld [vmem:[#allocation3 + $0x34] sm:$0xf0]  ;;  %v3875_v58 = vld [vmem:[#allocation3 + $0x1c] sm:$0xf]  ;;  %v2790_v60 = vor.u32 %v3882_v51, %v2787_v52  ;;  %v2754_v61 = vor.u32 %v3878_v55, %v2753_v53  ;;  %v3874_v63 = vld [vmem:[#allocation3 + $0x14] sm:$0xf] }
  0x44   :  { %v2763_v59 = vld [vmem:[#allocation3 + $0x38] sm:$0xf0]  ;;  %v2762_v62 = vor.u32 %v3879_v57, %v2761_v56  ;;  %v3942_v6 = vld [vmem:[#allocation5 + $0x30] sm:$0xff]  ;;  %v3941_v10 = vld [vmem:[#allocation5 + $0x28] sm:$0xff]  ;;  %s4593_s28 = sld [smem:[#allocation14_spill]]  ;;  %vm2717_vm1 = vcmask 517120  }
  0x45   :  { %585 = vmatpush.bf16.msrb.mxu0 %v2914_v0  ;;  %611 = vmatpush.bf16.msrb.mxu2 %v2922_v1  ;;  %v2755_v0 = vld [vmem:[#allocation3 + $0x30] sm:$0xf0]  ;;  %v2766_v1 = vor.u32 %v3875_v58, %v2763_v59  ;;  %v3943_v2 = vld [vmem:[#allocation5 + $0x38] sm:$0xff]  ;;  %v3940_v14 = vld [vmem:[#allocation5 + $0x20] sm:$0xff]  ;;  %s4594_s24 = sld [smem:[#allocation15_spill]]  ;;  %vm2726_vm2 = vcmask 1024  }
  0x46   :  { %624 = vmatpush.bf16.msrb.mxu3 %v2926_v5  ;;  %v3959_v3 = vld [vmem:[#allocation5 + $0xb8] sm:$0xff]  ;;  %v2758_v5 = vor.u32 %v3874_v63, %v2755_v0  ;;  %v3958_v8 = vld [vmem:[#allocation5 + $0xb0] sm:$0xff]  ;;  %v3949_v15 = vld [vmem:[#allocation5 + $0x68] sm:$0xff] }
  0x47   :  { %598 = vmatpush.bf16.msrb.mxu1 %v2918_v11  ;;  %v3967_v4 = vld [vmem:[#allocation5 + $0xf8] sm:$0xff]  ;;  %v3966_v9 = vld [vmem:[#allocation5 + $0xf0] sm:$0xff]  ;;  %v3956_v16 = vld [vmem:[#allocation5 + $0xa0] sm:$0xff] }
  0x48   :  { %v3951_v7 = vld [vmem:[#allocation5 + $0x78] sm:$0xff]  ;;  %v3950_v11 = vld [vmem:[#allocation5 + $0x70] sm:$0xff]  ;;  %v3948_v19 = vld [vmem:[#allocation5 + $0x60] sm:$0xff] }
  0x49   :  { %586 = vmatpush.bf16.msrb.mxu0 %v2882_v12  ;;  %612 = vmatpush.bf16.msrb.mxu2 %v2890_v13  ;;  %v3957_v12 = vld [vmem:[#allocation5 + $0xa8] sm:$0xff]  ;;  %v3939_v18 = vld [vmem:[#allocation5 + $0x18] sm:$0xff]  ;;  %v3938_v21 = vld [vmem:[#allocation5 + $0x10] sm:$0xff] }
  0x4a   :  { %625 = vmatpush.bf16.msrb.mxu3 %v2894_v17  ;;  %v3965_v13 = vld [vmem:[#allocation5 + $0xe8] sm:$0xff]  ;;  %v3964_v17 = vld [vmem:[#allocation5 + $0xe0] sm:$0xff]  ;;  %v3955_v20 = vld [vmem:[#allocation5 + $0x98] sm:$0xff] }
  0x4b   :  { %599 = vmatpush.bf16.msrb.mxu1 %v2886_v23  ;;  %v3947_v22 = vld [vmem:[#allocation5 + $0x58] sm:$0xff]  ;;  %v3954_v23 = vld [vmem:[#allocation5 + $0x90] sm:$0xff]  ;;  %v3953_v27 = vld [vmem:[#allocation5 + $0x88] sm:$0xff] }
  0x4c   :  { %v3962_v24 = vld [vmem:[#allocation5 + $0xd0] sm:$0xff]  ;;  %v3961_v28 = vld [vmem:[#allocation5 + $0xc8] sm:$0xff]  ;;  %v3936_v29 = vld [vmem:[#allocation5] sm:$0xff] }
  0x4d   :  { %587 = vmatpush.bf16.msrb.mxu0 %v2850_v25  ;;  %613 = vmatpush.bf16.msrb.mxu2 %v2858_v26  ;;  %v3937_v25 = vld [vmem:[#allocation5 + $0x8] sm:$0xff]  ;;  %v3946_v26 = vld [vmem:[#allocation5 + $0x50] sm:$0xff]  ;;  %v3975_v31 = vld [vmem:[#allocation5 + $0x138] sm:$0xff] }
  0x4e   :  { %626 = vmatpush.bf16.msrb.mxu3 %v2862_v30  ;;  %v3945_v30 = vld [vmem:[#allocation5 + $0x48] sm:$0xff]  ;;  %v3952_v32 = vld [vmem:[#allocation5 + $0x80] sm:$0xff]  ;;  %v3991_v34 = vld [vmem:[#allocation5 + $0x1b8] sm:$0xff] }
  0x4f   :  { %600 = vmatpush.bf16.msrb.mxu1 %v2854_v37  ;;  %v3960_v33 = vld [vmem:[#allocation5 + $0xc0] sm:$0xff]  ;;  %v3999_v35 = vld [vmem:[#allocation5 + $0x1f8] sm:$0xff]  ;;  %v3974_v37 = vld [vmem:[#allocation5 + $0x130] sm:$0xff] }
  0x50   :  { %v3944_v36 = vld [vmem:[#allocation5 + $0x40] sm:$0xff]  ;;  %v3983_v38 = vld [vmem:[#allocation5 + $0x178] sm:$0xff]  ;;  %v3990_v39 = vld [vmem:[#allocation5 + $0x1b0] sm:$0xff] }
  0x51   :  { %588 = vmatpush.bf16.msrb.mxu0 %v2818_v40  ;;  %614 = vmatpush.bf16.msrb.mxu2 %v2826_v41  ;;  %v3998_v40 = vld [vmem:[#allocation5 + $0x1f0] sm:$0xff]  ;;  %v3973_v41 = vld [vmem:[#allocation5 + $0x128] sm:$0xff]  ;;  %v3972_v45 = vld [vmem:[#allocation5 + $0x120] sm:$0xff] }
  0x52   :  { %627 = vmatpush.bf16.msrb.mxu3 %v2830_v42  ;;  %v3982_v42 = vld [vmem:[#allocation5 + $0x170] sm:$0xff]  ;;  %v3989_v43 = vld [vmem:[#allocation5 + $0x1a8] sm:$0xff]  ;;  %v3980_v51 = vld [vmem:[#allocation5 + $0x160] sm:$0xff] }
  0x53   :  { %601 = vmatpush.bf16.msrb.mxu1 %v2822_v47  ;;  %v3997_v44 = vld [vmem:[#allocation5 + $0x1e8] sm:$0xff]  ;;  %v3988_v47 = vld [vmem:[#allocation5 + $0x1a0] sm:$0xff]  ;;  %v3970_v52 = vld [vmem:[#allocation5 + $0x110] sm:$0xff] }
  0x54   :  { %v3981_v46 = vld [vmem:[#allocation5 + $0x168] sm:$0xff]  ;;  %v3987_v53 = vld [vmem:[#allocation5 + $0x198] sm:$0xff]  ;;  %v3986_v57 = vld [vmem:[#allocation5 + $0x190] sm:$0xff] }
  0x55   :  { %589 = vmatpush.bf16.msrb.mxu0 %v2786_v48  ;;  %615 = vmatpush.bf16.msrb.mxu2 %v2794_v49  ;;  %v3996_v48 = vld [vmem:[#allocation5 + $0x1e0] sm:$0xff]  ;;  %v3971_v49 = vld [vmem:[#allocation5 + $0x118] sm:$0xff]  ;;  %v3969_v55 = vld [vmem:[#allocation5 + $0x108] sm:$0xff] }
  0x56   :  { %628 = vmatpush.bf16.msrb.mxu3 %v2798_v54  ;;  %v3995_v54 = vld [vmem:[#allocation5 + $0x1d8] sm:$0xff]  ;;  %v3994_v58 = vld [vmem:[#allocation5 + $0x1d0] sm:$0xff]  ;;  %v3968_v59 = vld [vmem:[#allocation5 + $0x100] sm:$0xff] }
  0x57   :  { %602 = vmatpush.bf16.msrb.mxu1 %v2790_v60  ;;  %v3979_v56 = vld [vmem:[#allocation5 + $0x158] sm:$0xff]  ;;  %v3978_v60 = vld [vmem:[#allocation5 + $0x150] sm:$0xff]  ;;  %v3977_v63 = vld [vmem:[#allocation5 + $0x148] sm:$0xff] }
  0x58   :  { %v3984_v0 = vld [vmem:[#allocation5 + $0x180] sm:$0xff] }
  0x59   :  { %590 = vmatpush.bf16.msrb.mxu0 %v2754_v61  ;;  %616 = vmatpush.bf16.msrb.mxu2 %v2762_v62  ;;  %v3985_v61 = vld [vmem:[#allocation5 + $0x188] sm:$0xff] }
  0x5a   :  { %629 = vmatpush.bf16.msrb.mxu3 %v2766_v1  ;;  %v3993_v62 = vld [vmem:[#allocation5 + $0x1c8] sm:$0xff]  ;;  %v3992_v1 = vld [vmem:[#allocation5 + $0x1c0] sm:$0xff] }
  0x5b   :  { %603 = vmatpush.bf16.msrb.mxu1 %v2758_v5 }
  0x5c   :  { %591 = vmatmul.bf16.vlgmr.msrb.gmra.mxu0 %v4398_v50  ;;  %617 = vmatmul.bf16.vlgmr.msrb.gmra.mxu2 %v4398_v50 }
  0x5d   :  { %1167 = vmatpush.bf16.msra.mxu0 %v3943_v2  ;;  %1193 = vmatpush.bf16.msra.mxu2 %v3959_v3  ;;  %v3976_v2 = vld [vmem:[#allocation5 + $0x140] sm:$0xff] }
  0x5e   :  { %1206 = vmatpush.bf16.msra.mxu3 %v3967_v4  ;;  %604 = vmatmul.bf16.vlgmr.msrb.gmra.mxu1 %v4398_v50  ;;  %v4411_v3 = vld [vmem:[%s4571_s4] sm:$0xff] }
  0x5f   :  { %630 = vmatmul.bf16.vlgmr.msrb.gmra.mxu3 %v4398_v50  ;;  %1180 = vmatpush.bf16.msra.mxu1 %v3951_v7  ;;  %v3963_v50 = vld [vmem:[#allocation5 + $0xd8] sm:$0xff]  ;;  %v195_v4 = vperm.slane %v4411_v3, 0 }
  0x61   :  { %1168 = vmatpush.bf16.msra.mxu0 %v3942_v6  ;;  %1194 = vmatpush.bf16.msra.mxu2 %v3958_v8  ;;  %v196_v6 = vperm.slane %v4411_v3, 1  ;;  %v3473_v8 = vld [vmem:[#allocation7 + $0x1c0] sm:$0xf] }
  0x62   :  { %1207 = vmatpush.bf16.msra.mxu3 %v3966_v9  ;;  %v4060_v9 = vld [vmem:[#allocation7 + $0x1dc] sm:$0xf0] }
  0x63   :  { %1181 = vmatpush.bf16.msra.mxu1 %v3950_v11 }
  0x65   :  { %1169 = vmatpush.bf16.msra.mxu0 %v3941_v10  ;;  %1195 = vmatpush.bf16.msra.mxu2 %v3957_v12  ;;  %v197_v12 = vperm.slane %v4411_v3, 2 }
  0x66   :  { %1208 = vmatpush.bf16.msra.mxu3 %v3965_v13 }
  0x67   :  { %1182 = vmatpush.bf16.msra.mxu1 %v3949_v15  ;;  %v3474_v15 = vor.u32 %v4060_v9, %v3473_v8  ;;  %v3385_v8 = vld [vmem:[#allocation7 + $0x108] sm:$0xf] }
  0x68   :  { %v4037_v9 = vld [vmem:[#allocation7 + $0x124] sm:$0xf0] }
  0x69   :  { %1170 = vmatpush.bf16.msra.mxu0 %v3940_v14  ;;  %1196 = vmatpush.bf16.msra.mxu2 %v3956_v16  ;;  %v198_v14 = vperm.slane %v4411_v3, 3  ;;  %v4056_v16 = vld [vmem:[#allocation7 + $0x1c4] sm:$0xf] }
  0x6a   :  { %1209 = vmatpush.bf16.msra.mxu3 %v3964_v17  ;;  %v3475_v17 = vld [vmem:[#allocation7 + $0x1e0] sm:$0xf0] }
  0x6b   :  { %1183 = vmatpush.bf16.msra.mxu1 %v3948_v19  ;;  %v3441_v19 = vld [vmem:[#allocation7 + $0x180] sm:$0xf] }
  0x6d   :  { %1171 = vmatpush.bf16.msra.mxu0 %v3939_v18  ;;  %1197 = vmatpush.bf16.msra.mxu2 %v3955_v20  ;;  %v4052_v20 = vld [vmem:[#allocation7 + $0x19c] sm:$0xf0] }
  0x6e   :  { %1210 = vmatpush.bf16.msra.mxu3 %v3963_v50 }
  0x6f   :  { %1184 = vmatpush.bf16.msra.mxu1 %v3947_v22 }
  0x71   :  { %1172 = vmatpush.bf16.msra.mxu0 %v3938_v21  ;;  %1198 = vmatpush.bf16.msra.mxu2 %v3954_v23 }
  0x72   :  { %1211 = vmatpush.bf16.msra.mxu3 %v3962_v24  ;;  %v3481_v24 = vld [vmem:[#allocation7 + $0x1c8] sm:$0xf] }
  0x73   :  { %1185 = vmatpush.bf16.msra.mxu1 %v3946_v26  ;;  %v4057_v26 = vld [vmem:[#allocation7 + $0x1cc] sm:$0xf] }
  0x75   :  { %1173 = vmatpush.bf16.msra.mxu0 %v3937_v25  ;;  %1199 = vmatpush.bf16.msra.mxu2 %v3953_v27  ;;  %v4061_v25 = vld [vmem:[#allocation7 + $0x1e4] sm:$0xf0]  ;;  %v3478_v27 = vor.u32 %v4056_v16, %v3475_v17  ;;  %v3313_v16 = vld [vmem:[#allocation7 + $0x80] sm:$0xf] }
  0x76   :  { %1212 = vmatpush.bf16.msra.mxu3 %v3961_v28  ;;  %v4020_v17 = vld [vmem:[#allocation7 + $0x9c] sm:$0xf0] }
  0x77   :  { %1186 = vmatpush.bf16.msra.mxu1 %v3945_v30 }
  0x79   :  { %1174 = vmatpush.bf16.msra.mxu0 %v3936_v29  ;;  %1200 = vmatpush.bf16.msra.mxu2 %v3952_v32  ;;  %v3483_v32 = vld [vmem:[#allocation7 + $0x1e8] sm:$0xf0] }
  0x7a   :  { %1213 = vmatpush.bf16.msra.mxu3 %v3960_v33  ;;  %v4048_v33 = vld [vmem:[#allocation7 + $0x184] sm:$0xf] }
  0x7b   :  { %1187 = vmatpush.bf16.msra.mxu1 %v3944_v36  ;;  %v3409_v36 = vld [vmem:[#allocation7 + $0x140] sm:$0xf] }
  0x7d   :  { %1219 = vmatpush.bf16.msrb.mxu0 %v3975_v31  ;;  %1245 = vmatpush.bf16.msrb.mxu2 %v3991_v34  ;;  %v3442_v31 = vor.u32 %v4052_v20, %v3441_v19  ;;  %v3443_v34 = vld [vmem:[#allocation7 + $0x1a0] sm:$0xf0]  ;;  %v3353_v20 = vld [vmem:[#allocation7 + $0xc8] sm:$0xf] }
  0x7e   :  { %1258 = vmatpush.bf16.msrb.mxu3 %v3999_v35 }
  0x7f   :  { %1232 = vmatpush.bf16.msrb.mxu1 %v3983_v38 }
  0x81   :  { %1220 = vmatpush.bf16.msrb.mxu0 %v3974_v37  ;;  %1246 = vmatpush.bf16.msrb.mxu2 %v3990_v39  ;;  %v4044_v37 = vld [vmem:[#allocation7 + $0x15c] sm:$0xf0]  ;;  %v3482_v39 = vor.u32 %v4061_v25, %v3481_v24  ;;  %v3355_v24 = vld [vmem:[#allocation7 + $0xe8] sm:$0xf0]  ;;  %v4016_v25 = vld [vmem:[#allocation7 + $0x84] sm:$0xf] }
  0x82   :  { %1259 = vmatpush.bf16.msrb.mxu3 %v3998_v40 }
  0x83   :  { %1233 = vmatpush.bf16.msrb.mxu1 %v3982_v42 }
  0x85   :  { %1221 = vmatpush.bf16.msrb.mxu0 %v3973_v41  ;;  %1247 = vmatpush.bf16.msrb.mxu2 %v3989_v43  ;;  %v3486_v41 = vor.u32 %v4057_v26, %v3483_v32  ;;  %v3449_v43 = vld [vmem:[#allocation7 + $0x188] sm:$0xf]  ;;  %v3315_v26 = vld [vmem:[#allocation7 + $0xa0] sm:$0xf0] }
  0x86   :  { %1260 = vmatpush.bf16.msrb.mxu3 %v3997_v44  ;;  %v4053_v44 = vld [vmem:[#allocation7 + $0x1a4] sm:$0xf0] }
  0x87   :  { %1234 = vmatpush.bf16.msrb.mxu1 %v3981_v46  ;;  %v3446_v46 = vor.u32 %v4048_v33, %v3443_v34  ;;  %v3321_v32 = vld [vmem:[#allocation7 + $0x88] sm:$0xf]  ;;  %v4017_v34 = vld [vmem:[#allocation7 + $0x8c] sm:$0xf] }
  0x88   :  { %v4021_v33 = vld [vmem:[#allocation7 + $0xa4] sm:$0xf0] }
  0x89   :  { %1222 = vmatpush.bf16.msrb.mxu0 %v3972_v45  ;;  %1248 = vmatpush.bf16.msrb.mxu2 %v3988_v47  ;;  %v4049_v45 = vld [vmem:[#allocation7 + $0x18c] sm:$0xf] }
  0x8a   :  { %1261 = vmatpush.bf16.msrb.mxu3 %v3996_v48  ;;  %v3410_v48 = vor.u32 %v4044_v37, %v3409_v36  ;;  %v3323_v37 = vld [vmem:[#allocation7 + $0xa8] sm:$0xf0] }
  0x8b   :  { %1235 = vmatpush.bf16.msrb.mxu1 %v3980_v51  ;;  %v4040_v51 = vld [vmem:[#allocation7 + $0x144] sm:$0xf] }
  0x8d   :  { %1223 = vmatpush.bf16.msrb.mxu0 %v3971_v49  ;;  %1249 = vmatpush.bf16.msrb.mxu2 %v3987_v53  ;;  %v3451_v49 = vld [vmem:[#allocation7 + $0x1a8] sm:$0xf0]  ;;  %v3377_v53 = vld [vmem:[#allocation7 + $0x100] sm:$0xf] }
  0x8e   :  { %1262 = vmatpush.bf16.msrb.mxu3 %v3995_v54  ;;  %v4036_v54 = vld [vmem:[#allocation7 + $0x11c] sm:$0xf0] }
  0x8f   :  { %1236 = vmatpush.bf16.msrb.mxu1 %v3979_v56  ;;  %v3450_v56 = vor.u32 %v4053_v44, %v3449_v43  ;;  %v3322_v44 = vor.u32 %v4021_v33, %v3321_v32 }
  0x91   :  { %1224 = vmatpush.bf16.msrb.mxu0 %v3970_v52  ;;  %1250 = vmatpush.bf16.msrb.mxu2 %v3986_v57  ;;  %v3411_v52 = vld [vmem:[#allocation7 + $0x160] sm:$0xf0] }
  0x92   :  { %1263 = vmatpush.bf16.msrb.mxu3 %v3994_v58  ;;  %v3454_v58 = vor.u32 %v4049_v45, %v3451_v49  ;;  %v201_v45 = vperm.slane %v4411_v3, 6  ;;  %v4062_v49 = vld [vmem:[#allocation7 + $0x1ec] sm:$0xf0] }
  0x93   :  { %1237 = vmatpush.bf16.msrb.mxu1 %v3978_v60  ;;  %v4045_v60 = vld [vmem:[#allocation7 + $0x164] sm:$0xf0] }
  0x95   :  { %1225 = vmatpush.bf16.msrb.mxu0 %v3969_v55  ;;  %1251 = vmatpush.bf16.msrb.mxu2 %v3985_v61  ;;  %v4041_v61 = vld [vmem:[#allocation7 + $0x14c] sm:$0xf] }
  0x96   :  { %1264 = vmatpush.bf16.msrb.mxu3 %v3993_v62  ;;  %v3414_v62 = vor.u32 %v4040_v51, %v3411_v52  ;;  %v3289_v51 = vld [vmem:[#allocation7 + $0x48] sm:$0xf] }
  0x97   :  { %1238 = vmatpush.bf16.msrb.mxu1 %v3977_v63  ;;  %v3378_v63 = vor.u32 %v4036_v54, %v3377_v53  ;;  %v4013_v52 = vld [vmem:[#allocation7 + $0x64] sm:$0xf0] }
  0x99   :  { %1226 = vmatpush.bf16.msrb.mxu0 %v3968_v59  ;;  %1252 = vmatpush.bf16.msrb.mxu2 %v3984_v0  ;;  %v3417_v59 = vld [vmem:[#allocation7 + $0x148] sm:$0xf]  ;;  %v3419_v0 = vld [vmem:[#allocation7 + $0x168] sm:$0xf0] }
  0x9a   :  { %1265 = vmatpush.bf16.msrb.mxu3 %v3992_v1  ;;  %v4032_v1 = vld [vmem:[#allocation7 + $0x104] sm:$0xf] }
  0x9b   :  { %1239 = vmatpush.bf16.msrb.mxu1 %v3976_v2  ;;  %v3379_v2 = vld [vmem:[#allocation7 + $0x120] sm:$0xf0] }
  0xb9   :  { %v540_v5 = vpop.f32.mrf.mxu0 }
  0xba   :  { %v541_v7 = vadd.f32 %v540_v5, %v195_v4  ;;  %v3345_v4 = vld [vmem:[#allocation7 + $0xc0] sm:$0xf] }
  0xbb   :  { %v553_v11 = vpop.f32.mrf.mxu1  ;;  %v4028_v5 = vld [vmem:[#allocation7 + $0xdc] sm:$0xf0] }
  0xbc   :  { %v635_v10 = vmax.f32 %v541_v7, 0.0  ;;  %v554_v13 = vadd.f32 %v553_v11, %v196_v6  ;;  %v3418_v6 = vor.u32 %v4045_v60, %v3417_v59  ;;  %v3422_v7 = vor.u32 %v4041_v61, %v3419_v0  ;;  %v3457_v61 = vld [vmem:[#allocation7 + $0x190] sm:$0xf] }
  0xbd   :  { %v3382_v11 = vor.u32 %v4032_v1, %v3379_v2  ;;  %v3290_v2 = vor.u32 %v4013_v52, %v3289_v51  ;;  %v3433_v52 = vld [vmem:[#allocation7 + $0x158] sm:$0xf] }
  0xbe   :  { %v643_v18 = vpack.c.bf16 %v635_v10, %v635_v10  ;;  %v636_v50 = vmax.f32 %v554_v13, 0.0  ;;  %v4033_v10 = vld [vmem:[#allocation7 + $0x10c] sm:$0xf] }
  0xbf   :  { %v566_v21 = vpop.f32.mrf.mxu2  ;;  %v3387_v13 = vld [vmem:[#allocation7 + $0x128] sm:$0xf0] }
  0xc0   :  { %v567_v22 = vadd.f32 %v566_v21, %v197_v12  ;;  %1175 = vmatmul.bf16.vlgmr.msra.gmra.mxu0 %v643_v18  ;;  %v644_v28 = vpack.c.bf16 %v636_v50, %v636_v50  ;;  %v3346_v12 = vor.u32 %v4028_v5, %v3345_v4  ;;  %v3386_v18 = vor.u32 %v4037_v9, %v3385_v8  ;;  %v4029_v50 = vld [vmem:[#allocation7 + $0xe4] sm:$0xf0]  ;;  %v4025_v21 = vld [vmem:[#allocation7 + $0xcc] sm:$0xf]  ;;  %v4054_v4 = vld [vmem:[#allocation7 + $0x1ac] sm:$0xf0] }
  0xc1   :  { %v542_v30 = vpop.f32.mrf.mxu0  ;;  %1675 = vmatpush.bf16.msra.mxu0 %v3474_v15  ;;  %v3347_v15 = vld [vmem:[#allocation7 + $0xe0] sm:$0xf0]  ;;  %v3390_v19 = vor.u32 %v4033_v10, %v3387_v13  ;;  %v4058_v5 = vld [vmem:[#allocation7 + $0x1d4] sm:$0xf]  ;;  %v3257_v9 = vld [vmem:[#allocation7 + $0x8] sm:$0xf] }
  0xc2   :  { %v579_v23 = vpop.f32.mrf.mxu3  ;;  %v637_v35 = vmax.f32 %v567_v22, 0.0  ;;  %1188 = vmatmul.bf16.vlgmr.msra.gmra.mxu1 %v644_v28  ;;  %v4012_v28 = vld [vmem:[#allocation7 + $0x5c] sm:$0xf0]  ;;  %v3354_v30 = vor.u32 %v4029_v50, %v3353_v20  ;;  %v3259_v13 = vld [vmem:[#allocation7 + $0x28] sm:$0xf0] }
  0xc3   :  { %v580_v29 = vadd.f32 %v579_v23, %v198_v14  ;;  %1688 = vmatpush.bf16.msra.mxu1 %v3478_v27  ;;  %v555_v42 = vpop.f32.mrf.mxu1  ;;  %v4024_v14 = vld [vmem:[#allocation7 + $0xc4] sm:$0xf]  ;;  %v3314_v23 = vor.u32 %v4020_v17, %v3313_v16  ;;  %v3281_v27 = vld [vmem:[#allocation7 + $0x40] sm:$0xf]  ;;  %v4063_v20 = vld [vmem:[#allocation7 + $0x1f4] sm:$0xf0] }
  0xc4   :  { %v645_v40 = vpack.c.bf16 %v637_v35, %v637_v35  ;;  %v3350_v22 = vor.u32 %v4024_v14, %v3347_v15  ;;  %v3318_v35 = vor.u32 %v4016_v25, %v3315_v26  ;;  %v3282_v36 = vor.u32 %v4012_v28, %v3281_v27  ;;  %v3249_v42 = vld [vmem:[#allocation7] sm:$0xf]  ;;  %v4059_v50 = vld [vmem:[#allocation7 + $0x1dc] sm:$0xf]  ;;  %v4050_v25 = vld [vmem:[#allocation7 + $0x194] sm:$0xf] }
  0xc5   :  { %v638_v38 = vmax.f32 %v580_v29, 0.0  ;;  %1676 = vmatpush.bf16.msra.mxu0 %v3442_v31  ;;  %v199_v29 = vperm.slane %v4411_v3, 4  ;;  %v3358_v31 = vor.u32 %v4025_v21, %v3355_v24  ;;  %v3499_v24 = vld [vmem:[#allocation7 + $0x1f8] sm:$0xf0]  ;;  %v3459_v26 = vld [vmem:[#allocation7 + $0x1b0] sm:$0xf0] }
  0xc6   :  { %1201 = vmatmul.bf16.vlgmr.msra.gmra.mxu2 %v645_v40 }
  0xc7   :  { %v646_v47 = vpack.c.bf16 %v638_v38, %v638_v38  ;;  %v568_v55 = vpop.f32.mrf.mxu2  ;;  %1701 = vmatpush.bf16.msra.mxu2 %v3482_v39  ;;  %1689 = vmatpush.bf16.msra.mxu1 %v3446_v46  ;;  %v4008_v38 = vld [vmem:[#allocation7 + $0x44] sm:$0xf]  ;;  %v4004_v46 = vld [vmem:[#allocation7 + $0x1c] sm:$0xf0] }
  0xc8   :  { %v3283_v39 = vld [vmem:[#allocation7 + $0x60] sm:$0xf0]  ;;  %v3250_v60 = vor.u32 %v4004_v46, %v3249_v42  ;;  %v3467_v42 = vld [vmem:[#allocation7 + $0x1b8] sm:$0xf0]  ;;  %v4038_v46 = vld [vmem:[#allocation7 + $0x12c] sm:$0xf0] }
  0xc9   :  { %1214 = vmatmul.bf16.vlgmr.msra.gmra.mxu3 %v646_v47  ;;  %1677 = vmatpush.bf16.msra.mxu0 %v3410_v48  ;;  %v3489_v47 = vld [vmem:[#allocation7 + $0x1d0] sm:$0xf]  ;;  %v3326_v48 = vor.u32 %v4017_v34, %v3323_v37  ;;  %v3286_v53 = vor.u32 %v4008_v38, %v3283_v39  ;;  %v3465_v37 = vld [vmem:[#allocation7 + $0x198] sm:$0xf]  ;;  %v4051_v39 = vld [vmem:[#allocation7 + $0x19c] sm:$0xf] }
  0xca   :  { %v581_v57 = vpop.f32.mrf.mxu3  ;;  %1714 = vmatpush.bf16.msra.mxu3 %v3486_v41  ;;  %v200_v41 = vperm.slane %v4411_v3, 5  ;;  %v3490_v1 = vor.u32 %v4062_v49, %v3489_v47  ;;  %v4055_v38 = vld [vmem:[#allocation7 + $0x1b4] sm:$0xf0]  ;;  %v3470_v51 = vor.u32 %v4051_v39, %v3467_v42  ;;  %v4002_v42 = vld [vmem:[#allocation7 + $0x14] sm:$0xf] }
  0xcb   :  { %1702 = vmatpush.bf16.msra.mxu2 %v3450_v56  ;;  %1690 = vmatpush.bf16.msra.mxu1 %v3414_v62  ;;  %v202_v56 = vperm.slane %v4411_v3, 7  ;;  %v4009_v57 = vld [vmem:[#allocation7 + $0x4c] sm:$0xf]  ;;  %v4000_v62 = vld [vmem:[#allocation7 + $0x4] sm:$0xf]  ;;  %v3466_v49 = vor.u32 %v4055_v38, %v3465_v37 }
  0xcc   :  { %v4005_v3 = vld [vmem:[#allocation7 + $0x24] sm:$0xf0]  ;;  %v4015_v37 = vld [vmem:[#allocation7 + $0x74] sm:$0xf0] }
  0xcd   :  { %1678 = vmatpush.bf16.msra.mxu0 %v3378_v63  ;;  %v3251_v63 = vld [vmem:[#allocation7 + $0x20] sm:$0xf0] }
  0xce   :  { %1715 = vmatpush.bf16.msra.mxu3 %v3454_v58  ;;  %v3291_v58 = vld [vmem:[#allocation7 + $0x68] sm:$0xf0]  ;;  %v3254_v14 = vor.u32 %v4000_v62, %v3251_v63  ;;  %v4424_v63 = vld [vmem:[%s4593_s28] sm:$0x1] }
  0xcf   :  { %1703 = vmatpush.bf16.msra.mxu2 %v3418_v6  ;;  %1691 = vmatpush.bf16.msra.mxu1 %v3382_v11  ;;  %v3491_v6 = vld [vmem:[#allocation7 + $0x1f0] sm:$0xf0]  ;;  %v3294_v8 = vor.u32 %v4009_v57, %v3291_v58  ;;  %v3435_v57 = vld [vmem:[#allocation7 + $0x178] sm:$0xf0] }
  0xd0   :  { %v3494_v21 = vor.u32 %v4058_v5, %v3491_v6  ;;  %v4034_v58 = vld [vmem:[#allocation7 + $0x114] sm:$0xf] }
  0xd1   :  { %1679 = vmatpush.bf16.msra.mxu0 %v3346_v12  ;;  %v4001_v12 = vld [vmem:[#allocation7 + $0xc] sm:$0xf] }
  0xd2   :  { %1716 = vmatpush.bf16.msra.mxu3 %v3422_v7 }
  0xd3   :  { %1704 = vmatpush.bf16.msra.mxu2 %v3386_v18  ;;  %1692 = vmatpush.bf16.msra.mxu1 %v3350_v22  ;;  %v3458_v22 = vor.u32 %v4054_v4, %v3457_v61  ;;  %v4030_v61 = vld [vmem:[#allocation7 + $0xec] sm:$0xf0]  ;;  %v4035_v4 = vld [vmem:[#allocation7 + $0x11c] sm:$0xf] }
  0xd5   :  { %1680 = vmatpush.bf16.msra.mxu0 %v3314_v23  ;;  %v3258_v23 = vor.u32 %v4005_v3, %v3257_v9  ;;  %v3363_v9 = vld [vmem:[#allocation7 + $0xf0] sm:$0xf0]  ;;  %v3329_v3 = vld [vmem:[#allocation7 + $0x90] sm:$0xf] }
  0xd6   :  { %1717 = vmatpush.bf16.msra.mxu3 %v3390_v19  ;;  %v3497_v19 = vld [vmem:[#allocation7 + $0x1d8] sm:$0xf] }
  0xd7   :  { %1705 = vmatpush.bf16.msra.mxu2 %v3354_v30  ;;  %1693 = vmatpush.bf16.msra.mxu1 %v3318_v35  ;;  %v4046_v30 = vld [vmem:[#allocation7 + $0x16c] sm:$0xf0]  ;;  %v3498_v32 = vor.u32 %v4063_v20, %v3497_v19  ;;  %v4018_v19 = vld [vmem:[#allocation7 + $0x94] sm:$0xf] }
  0xd8   :  { %v3331_v20 = vld [vmem:[#allocation7 + $0xb0] sm:$0xf0] }
  0xd9   :  { %v592_v40 = vpop.f32.mrf.mxu0  ;;  %1681 = vmatpush.bf16.msra.mxu0 %v3282_v36  ;;  %v3502_v36 = vor.u32 %v4059_v50, %v3499_v24  ;;  %v3297_v50 = vld [vmem:[#allocation7 + $0x50] sm:$0xf]  ;;  %v3337_v24 = vld [vmem:[#allocation7 + $0x98] sm:$0xf] }
  0xda   :  { %v593_v43 = vadd.f32 %v592_v40, %v199_v29  ;;  %1718 = vmatpush.bf16.msra.mxu3 %v3358_v31  ;;  %v3425_v29 = vld [vmem:[#allocation7 + $0x150] sm:$0xf]  ;;  %v3262_v31 = vor.u32 %v4001_v12, %v3259_v13  ;;  %v3462_v40 = vor.u32 %v4050_v25, %v3459_v26  ;;  %v3369_v13 = vld [vmem:[#allocation7 + $0xd8] sm:$0xf]  ;;  %v4019_v26 = vld [vmem:[#allocation7 + $0x9c] sm:$0xf] }
  0xdb   :  { %v605_v55 = vpop.f32.mrf.mxu1  ;;  %1706 = vmatpush.bf16.msra.mxu2 %v3322_v44  ;;  %1694 = vmatpush.bf16.msra.mxu1 %v3286_v53  ;;  %v3427_v44 = vld [vmem:[#allocation7 + $0x170] sm:$0xf0]  ;;  %v4047_v53 = vld [vmem:[#allocation7 + $0x174] sm:$0xf0] }
  0xdc   :  { %v639_v54 = vmax.f32 %v593_v43, 0.0  ;;  %v606_v59 = vadd.f32 %v605_v55, %v200_v41  ;;  %v3426_v41 = vor.u32 %v4046_v30, %v3425_v29  ;;  %v4042_v43 = vld [vmem:[#allocation7 + $0x154] sm:$0xf]  ;;  %v3434_v62 = vor.u32 %v4047_v53, %v3433_v52  ;;  %v4023_v25 = vld [vmem:[#allocation7 + $0xb4] sm:$0xf0] }
  0xdd   :  { %1682 = vmatpush.bf16.msra.mxu0 %v3250_v60  ;;  %v3430_v55 = vor.u32 %v4042_v43, %v3427_v44  ;;  %v3361_v60 = vld [vmem:[#allocation7 + $0xd0] sm:$0xf]  ;;  %v3339_v29 = vld [vmem:[#allocation7 + $0xb8] sm:$0xf0]  ;;  %v4010_v30 = vld [vmem:[#allocation7 + $0x54] sm:$0xf] }
  0xde   :  { %v647_v0 = vpack.c.bf16 %v639_v54, %v639_v54  ;;  %v640_v7 = vmax.f32 %v606_v59, 0.0  ;;  %1719 = vmatpush.bf16.msra.mxu3 %v3326_v48  ;;  %v4043_v54 = vld [vmem:[#allocation7 + $0x15c] sm:$0xf]  ;;  %v3395_v59 = vld [vmem:[#allocation7 + $0x130] sm:$0xf0]  ;;  %v3362_v6 = vor.u32 %v4030_v61, %v3361_v60 }
  0xdf   :  { %v618_v10 = vpop.f32.mrf.mxu2  ;;  %1707 = vmatpush.bf16.msra.mxu2 %v3290_v2  ;;  %1695 = vmatpush.bf16.msra.mxu1 %v3254_v14  ;;  %v4039_v2 = vld [vmem:[#allocation7 + $0x134] sm:$0xf0]  ;;  %v3398_v5 = vor.u32 %v4034_v58, %v3395_v59  ;;  %v3267_v43 = vld [vmem:[#allocation7 + $0x30] sm:$0xf0]  ;;  %v4068_v58 = vld [vmem:[#allocation8 + $0x20] sm:$0xff] }
  0xe0   :  { %1227 = vmatmul.bf16.vlgmr.msrb.gmra.mxu0 %v647_v0  ;;  %v648_v15 = vpack.c.bf16 %v640_v7, %v640_v7  ;;  %v619_v16 = vadd.f32 %v618_v10, %v201_v45  ;;  %v3393_v45 = vld [vmem:[#allocation7 + $0x110] sm:$0xf]  ;;  %v3438_v0 = vor.u32 %v4043_v54, %v3435_v57  ;;  %v3403_v7 = vld [vmem:[#allocation7 + $0x138] sm:$0xf0]  ;;  %v4031_v14 = vld [vmem:[#allocation7 + $0xf4] sm:$0xf0]  ;;  %v3270_v52 = vor.u32 %v4002_v42, %v3267_v43 }
  0xe1   :  { %v594_v18 = vpop.f32.mrf.mxu0  ;;  %1727 = vmatpush.bf16.msrb.mxu0 %v3490_v1  ;;  %v3401_v1 = vld [vmem:[#allocation7 + $0x118] sm:$0xf]  ;;  %v4022_v10 = vld [vmem:[#allocation7 + $0xac] sm:$0xf0]  ;;  %v3406_v12 = vor.u32 %v4035_v4, %v3403_v7  ;;  %v4077_v7 = vld [vmem:[#allocation8 + $0x68] sm:$0xff] }
  0xe2   :  { %v631_v11 = vpop.f32.mrf.mxu3  ;;  %v641_v27 = vmax.f32 %v619_v16, 0.0  ;;  %1240 = vmatmul.bf16.vlgmr.msrb.gmra.mxu1 %v648_v15  ;;  %1720 = vmatpush.bf16.msra.mxu3 %v3294_v8  ;;  %v4026_v8 = vld [vmem:[#allocation7 + $0xd4] sm:$0xf]  ;;  %v4027_v15 = vld [vmem:[#allocation7 + $0xdc] sm:$0xf]  ;;  %v4097_v42 = vld [vmem:[#allocation8 + $0x108] sm:$0xff] }
  0xe3   :  { %v632_v17 = vadd.f32 %v631_v11, %v202_v56  ;;  %v607_v33 = vpop.f32.mrf.mxu1  ;;  %1740 = vmatpush.bf16.msrb.mxu1 %v3494_v21  ;;  %1708 = vmatpush.bf16.msra.mxu2 %v3258_v23  ;;  %v3394_v56 = vor.u32 %v4038_v46, %v3393_v45  ;;  %v3402_v11 = vor.u32 %v4039_v2, %v3401_v1  ;;  %v3371_v18 = vld [vmem:[#allocation7 + $0xf8] sm:$0xf0]  ;;  %v4014_v21 = vld [vmem:[#allocation7 + $0x6c] sm:$0xf0]  ;;  %v4065_v1 = vld [vmem:[#allocation8 + $0x8] sm:$0xff] }
  0xe4   :  { %v649_v34 = vpack.c.bf16 %v641_v27, %v641_v27  ;;  %v3366_v16 = vor.u32 %v4026_v8, %v3363_v9  ;;  %v3374_v23 = vor.u32 %v4027_v15, %v3371_v18  ;;  %v3334_v27 = vor.u32 %v4018_v19, %v3331_v20  ;;  %v4006_v33 = vld [vmem:[#allocation7 + $0x2c] sm:$0xf0]  ;;  %v4071_v44 = vld [vmem:[#allocation8 + $0x38] sm:$0xff]  ;;  %v4084_v2 = vld [vmem:[#allocation8 + $0xa0] sm:$0xff] }
  0xe5   :  { %v642_v28 = vmax.f32 %v632_v17, 0.0  ;;  %1728 = vmatpush.bf16.msrb.mxu0 %v3458_v22  ;;  %v3330_v17 = vor.u32 %v4022_v10, %v3329_v3  ;;  %v3370_v22 = vor.u32 %v4031_v14, %v3369_v13  ;;  %v4070_v53 = vld [vmem:[#allocation8 + $0x30] sm:$0xff]  ;;  %v4087_v57 = vld [vmem:[#allocation8 + $0xb8] sm:$0xff]  ;;  %v4076_v10 = vld [vmem:[#allocation8 + $0x60] sm:$0xff] }
  0xe6   :  { %1253 = vmatmul.bf16.vlgmr.msrb.gmra.mxu2 %v649_v34  ;;  %1721 = vmatpush.bf16.msra.mxu3 %v3262_v31  ;;  %v3299_v31 = vld [vmem:[#allocation7 + $0x70] sm:$0xf0]  ;;  %v3338_v34 = vor.u32 %v4023_v25, %v3337_v24  ;;  %v4067_v60 = vld [vmem:[#allocation8 + $0x18] sm:$0xff]  ;;  %v4081_v14 = vld [vmem:[#allocation8 + $0x88] sm:$0xff] }
  0xe7   :  { %v650_v35 = vpack.c.bf16 %v642_v28, %v642_v28  ;;  %v620_v47 = vpop.f32.mrf.mxu2  ;;  %1753 = vmatpush.bf16.msrb.mxu2 %v3498_v32  ;;  %1741 = vmatpush.bf16.msrb.mxu1 %v3462_v40  ;;  %v3298_v28 = vor.u32 %v4014_v21, %v3297_v50  ;;  %v3265_v32 = vld [vmem:[#allocation7 + $0x10] sm:$0xf]  ;;  %v3302_v38 = vor.u32 %v4010_v30, %v3299_v31  ;;  %v4011_v40 = vld [vmem:[#allocation7 + $0x5c] sm:$0xf]  ;;  %v4101_v18 = vld [vmem:[#allocation8 + $0x128] sm:$0xff] }
  0xe8   :  { %v3266_v39 = vor.u32 %v4006_v33, %v3265_v32  ;;  %v3273_v47 = vld [vmem:[#allocation7 + $0x18] sm:$0xf]  ;;  %v4086_v59 = vld [vmem:[#allocation8 + $0xb0] sm:$0xff]  ;;  %v4164_v13 = vld [vmem:[%s4573_s6] ss:$0 sm:$0xff] }
  0xe9   :  { %1266 = vmatmul.bf16.vlgmr.msrb.gmra.mxu3 %v650_v35  ;;  %1729 = vmatpush.bf16.msrb.mxu0 %v3426_v41  ;;  %v3342_v35 = vor.u32 %v4019_v26, %v3339_v29  ;;  %v3307_v41 = vld [vmem:[#allocation7 + $0x78] sm:$0xf0]  ;;  %v4066_v61 = vld [vmem:[#allocation8 + $0x10] sm:$0xff]  ;;  %v4080_v20 = vld [vmem:[#allocation8 + $0x80] sm:$0xff] }
  0xea   :  { %v633_v48 = vpop.f32.mrf.mxu3  ;;  %1766 = vmatpush.bf16.msrb.mxu3 %v3502_v36  ;;  %v3305_v36 = vld [vmem:[#allocation7 + $0x58] sm:$0xf]  ;;  %v3310_v46 = vor.u32 %v4011_v40, %v3307_v41  ;;  %v4078_v4 = vld [vmem:[#allocation8 + $0x70] sm:$0xff]  ;;  %v4072_v33 = vld [vmem:[#allocation8 + $0x40] sm:$0xff] }
  0xeb   :  { %1754 = vmatpush.bf16.msrb.mxu2 %v3466_v49  ;;  %1742 = vmatpush.bf16.msrb.mxu1 %v3430_v55  ;;  %v3306_v45 = vor.u32 %v4015_v37, %v3305_v36  ;;  %v4007_v48 = vld [vmem:[#allocation7 + $0x34] sm:$0xf0]  ;;  %v4003_v49 = vld [vmem:[#allocation7 + $0x1c] sm:$0xf]  ;;  %v4094_v8 = vld [vmem:[#allocation8 + $0xf0] sm:$0xff] }
  0xec   :  { %v3274_v54 = vor.u32 %v4007_v48, %v3273_v47  ;;  %v4103_v9 = vld [vmem:[#allocation8 + $0x138] sm:$0xff]  ;;  %v4082_v3 = vld [vmem:[#allocation8 + $0x90] sm:$0xff]  ;;  %v4088_v41 = vld [vmem:[#allocation8 + $0xc0] sm:$0xff] }
  0xed   :  { %1730 = vmatpush.bf16.msrb.mxu0 %v3394_v56  ;;  %v4069_v56 = vld [vmem:[#allocation8 + $0x28] sm:$0xff]  ;;  %v4074_v50 = vld [vmem:[#allocation8 + $0x50] sm:$0xff]  ;;  %v4091_v21 = vld [vmem:[#allocation8 + $0xd8] sm:$0xff] }
  0xee   :  { %1767 = vmatpush.bf16.msrb.mxu3 %v3470_v51  ;;  %v3275_v51 = vld [vmem:[#allocation7 + $0x38] sm:$0xf0]  ;;  %v4118_v30 = vld [vmem:[#allocation8 + $0x1b0] sm:$0xff]  ;;  %v4116_v43 = vld [vmem:[#allocation8 + $0x1a0] sm:$0xff] }
  0xef   :  { %1755 = vmatpush.bf16.msrb.mxu2 %v3434_v62  ;;  %1743 = vmatpush.bf16.msrb.mxu1 %v3398_v5  ;;  %v3278_v55 = vor.u32 %v4003_v49, %v3275_v51  ;;  %v4085_v62 = vld [vmem:[#allocation8 + $0xa8] sm:$0xff]  ;;  %v4064_v5 = vld [vmem:[#allocation8] sm:$0xff]  ;;  %v4119_v24 = vld [vmem:[#allocation8 + $0x1b8] sm:$0xff] }
  0xf0   :  { %1683 = vmatmul.bf16.vlgmr.msra.gmra.mxu0 %v4424_v63  ;;  %v4099_v29 = vld [vmem:[#allocation8 + $0x118] sm:$0xff]  ;;  %v4096_v47 = vld [vmem:[#allocation8 + $0x100] sm:$0xff]  ;;  %v4109_v51 = vld [vmem:[#allocation8 + $0x168] sm:$0xff] }
  0xf1   :  { %1731 = vmatpush.bf16.msrb.mxu0 %v3362_v6  ;;  %v4083_v6 = vld [vmem:[#allocation8 + $0x98] sm:$0xff] }
  0xf2   :  { %1768 = vmatpush.bf16.msrb.mxu3 %v3438_v0  ;;  %1696 = vmatmul.bf16.vlgmr.msra.gmra.mxu1 %v4424_v63  ;;  %v4079_v0 = vld [vmem:[#allocation8 + $0x78] sm:$0xff] }
  0xf3   :  { %1756 = vmatpush.bf16.msrb.mxu2 %v3402_v11  ;;  %1744 = vmatpush.bf16.msrb.mxu1 %v3366_v16  ;;  %v4093_v11 = vld [vmem:[#allocation8 + $0xe8] sm:$0xff]  ;;  %v4075_v16 = vld [vmem:[#allocation8 + $0x58] sm:$0xff] }
  0xf4   :  { %v4115_v48 = vld [vmem:[#allocation8 + $0x198] sm:$0xff] }
  0xf5   :  { %1732 = vmatpush.bf16.msrb.mxu0 %v3330_v17  ;;  %v4092_v17 = vld [vmem:[#allocation8 + $0xe0] sm:$0xff] }
  0xf6   :  { %1769 = vmatpush.bf16.msrb.mxu3 %v3406_v12  ;;  %1709 = vmatmul.bf16.vlgmr.msra.gmra.mxu2 %v4424_v63  ;;  %v4102_v12 = vld [vmem:[#allocation8 + $0x130] sm:$0xff] }
  0xf7   :  { %1757 = vmatpush.bf16.msrb.mxu2 %v3370_v22  ;;  %1745 = vmatpush.bf16.msrb.mxu1 %v3334_v27  ;;  %v4073_v27 = vld [vmem:[#allocation8 + $0x48] sm:$0xff] }
  0xf9   :  { %1722 = vmatmul.bf16.vlgmr.msra.gmra.mxu3 %v4424_v63  ;;  %1733 = vmatpush.bf16.msrb.mxu0 %v3298_v28  ;;  %v4090_v28 = vld [vmem:[#allocation8 + $0xd0] sm:$0xff] }
  0xfa   :  { %1770 = vmatpush.bf16.msrb.mxu3 %v3374_v23  ;;  %v4100_v23 = vld [vmem:[#allocation8 + $0x120] sm:$0xff] }
  0xfb   :  { %1758 = vmatpush.bf16.msrb.mxu2 %v3338_v34  ;;  %1746 = vmatpush.bf16.msrb.mxu1 %v3302_v38  ;;  %v4089_v34 = vld [vmem:[#allocation8 + $0xc8] sm:$0xff] }
  0xfc   :  { %v4117_v38 = vld [vmem:[#allocation8 + $0x1a8] sm:$0xff] }
  0xfd   :  { %1734 = vmatpush.bf16.msrb.mxu0 %v3266_v39  ;;  %v4111_v39 = vld [vmem:[#allocation8 + $0x178] sm:$0xff] }
  0xfe   :  { %1771 = vmatpush.bf16.msrb.mxu3 %v3342_v35  ;;  %v4098_v35 = vld [vmem:[#allocation8 + $0x110] sm:$0xff] }
  0xff   :  { %1759 = vmatpush.bf16.msrb.mxu2 %v3306_v45  ;;  %1747 = vmatpush.bf16.msrb.mxu1 %v3270_v52  ;;  %v4127_v45 = vld [vmem:[#allocation8 + $0x1f8] sm:$0xff]  ;;  %v4126_v52 = vld [vmem:[#allocation8 + $0x1f0] sm:$0xff] }
 0x100   :  { %1735 = vmatmul.bf16.vlgmr.msrb.gmra.mxu0 %v4424_v63 }
 0x101   :  { %2311 = vmatpush.bf16.msra.mxu0 %v4071_v44  ;;  %v4110_v44 = vld [vmem:[#allocation8 + $0x170] sm:$0xff] }
 0x102   :  { %1772 = vmatpush.bf16.msrb.mxu3 %v3310_v46  ;;  %1748 = vmatmul.bf16.vlgmr.msrb.gmra.mxu1 %v4424_v63 }
 0x103   :  { %1760 = vmatpush.bf16.msrb.mxu2 %v3274_v54  ;;  %2324 = vmatpush.bf16.msra.mxu1 %v4079_v0  ;;  %v4108_v54 = vld [vmem:[#allocation8 + $0x160] sm:$0xff]  ;;  %v4123_v0 = vld [vmem:[#allocation8 + $0x1d8] sm:$0xff] }
 0x105   :  { %2312 = vmatpush.bf16.msra.mxu0 %v4070_v53  ;;  %v4114_v53 = vld [vmem:[#allocation8 + $0x190] sm:$0xff] }
 0x106   :  { %1773 = vmatpush.bf16.msrb.mxu3 %v3278_v55  ;;  %1761 = vmatmul.bf16.vlgmr.msrb.gmra.mxu2 %v4424_v63  ;;  %v4125_v55 = vld [vmem:[#allocation8 + $0x1e8] sm:$0xff] }
 0x107   :  { %2337 = vmatpush.bf16.msra.mxu2 %v4087_v57  ;;  %2325 = vmatpush.bf16.msra.mxu1 %v4078_v4  ;;  %v4122_v4 = vld [vmem:[#allocation8 + $0x1d0] sm:$0xff] }
 0x109   :  { %1774 = vmatmul.bf16.vlgmr.msrb.gmra.mxu3 %v4424_v63  ;;  %2313 = vmatpush.bf16.msra.mxu0 %v4069_v56  ;;  %v4095_v63 = vld [vmem:[#allocation8 + $0xf8] sm:$0xff]  ;;  %v4113_v56 = vld [vmem:[#allocation8 + $0x188] sm:$0xff] }
 0x10a   :  { %2350 = vmatpush.bf16.msra.mxu3 %v4095_v63  ;;  %v4446_v63 = vld [vmem:[%s4575_s8] sm:$0xff] }
 0x10b   :  { %2338 = vmatpush.bf16.msra.mxu2 %v4086_v59  ;;  %2326 = vmatpush.bf16.msra.mxu1 %v4077_v7  ;;  %v4124_v59 = vld [vmem:[#allocation8 + $0x1e0] sm:$0xff]  ;;  %v4121_v7 = vld [vmem:[#allocation8 + $0x1c8] sm:$0xff] }
 0x10d   :  { %2314 = vmatpush.bf16.msra.mxu0 %v4068_v58  ;;  %v4107_v58 = vld [vmem:[#allocation8 + $0x158] sm:$0xff] }
 0x10e   :  { %2351 = vmatpush.bf16.msra.mxu3 %v4094_v8 }
 0x10f   :  { %2339 = vmatpush.bf16.msra.mxu2 %v4085_v62  ;;  %2327 = vmatpush.bf16.msra.mxu1 %v4076_v10  ;;  %v4106_v62 = vld [vmem:[#allocation8 + $0x150] sm:$0xff] }
 0x111   :  { %2315 = vmatpush.bf16.msra.mxu0 %v4067_v60 }
 0x112   :  { %2352 = vmatpush.bf16.msra.mxu3 %v4093_v11  ;;  %v1340_v11 = vperm.slane %v4446_v63, 1 }
 0x113   :  { %2340 = vmatpush.bf16.msra.mxu2 %v4084_v2  ;;  %2328 = vmatpush.bf16.msra.mxu1 %v4075_v16  ;;  %v4105_v2 = vld [vmem:[#allocation8 + $0x148] sm:$0xff] }
 0x115   :  { %2316 = vmatpush.bf16.msra.mxu0 %v4066_v61  ;;  %v4112_v61 = vld [vmem:[#allocation8 + $0x180] sm:$0xff] }
 0x116   :  { %2353 = vmatpush.bf16.msra.mxu3 %v4092_v17  ;;  %v4135_v17 = vld [vmem:[%s4578_s11 + $0x38] sm:$0xff] }
 0x117   :  { %2341 = vmatpush.bf16.msra.mxu2 %v4083_v6  ;;  %2329 = vmatpush.bf16.msra.mxu1 %v4074_v50  ;;  %v4104_v6 = vld [vmem:[#allocation8 + $0x140] sm:$0xff] }
 0x119   :  { %2317 = vmatpush.bf16.msra.mxu0 %v4065_v1 }
 0x11a   :  { %2354 = vmatpush.bf16.msra.mxu3 %v4091_v21 }
 0x11b   :  { %2342 = vmatpush.bf16.msra.mxu2 %v4082_v3  ;;  %2330 = vmatpush.bf16.msra.mxu1 %v4073_v27  ;;  %v1339_v3 = vperm.slane %v4446_v63, 0  ;;  %v4133_v27 = vld [vmem:[%s4578_s11 + $0x28] sm:$0xff] }
 0x11d   :  { %2318 = vmatpush.bf16.msra.mxu0 %v4064_v5 }
 0x11e   :  { %2355 = vmatpush.bf16.msra.mxu3 %v4090_v28 }
 0x11f   :  { %2343 = vmatpush.bf16.msra.mxu2 %v4081_v14  ;;  %2331 = vmatpush.bf16.msra.mxu1 %v4072_v33 }
 0x121   :  { %2363 = vmatpush.bf16.msrb.mxu0 %v4103_v9 }
 0x122   :  { %2356 = vmatpush.bf16.msra.mxu3 %v4089_v34 }
 0x123   :  { %2344 = vmatpush.bf16.msra.mxu2 %v4080_v20  ;;  %2376 = vmatpush.bf16.msrb.mxu1 %v4111_v39 }
 0x125   :  { %2364 = vmatpush.bf16.msrb.mxu0 %v4102_v12  ;;  %v4120_v12 = vld [vmem:[#allocation8 + $0x1c0] sm:$0xff] }
 0x126   :  { %2357 = vmatpush.bf16.msra.mxu3 %v4088_v41 }
 0x127   :  { %2389 = vmatpush.bf16.msrb.mxu2 %v4119_v24  ;;  %2377 = vmatpush.bf16.msrb.mxu1 %v4110_v44  ;;  %v1341_v24 = vperm.slane %v4446_v63, 2 }
 0x129   :  { %2365 = vmatpush.bf16.msrb.mxu0 %v4101_v18 }
 0x12a   :  { %2402 = vmatpush.bf16.msrb.mxu3 %v4127_v45 }
 0x12b   :  { %2390 = vmatpush.bf16.msrb.mxu2 %v4118_v30  ;;  %2378 = vmatpush.bf16.msrb.mxu1 %v4109_v51 }
 0x12d   :  { %2366 = vmatpush.bf16.msrb.mxu0 %v4100_v23  ;;  %v4134_v23 = vld [vmem:[%s4578_s11 + $0x30] sm:$0xff] }
 0x12e   :  { %2403 = vmatpush.bf16.msrb.mxu3 %v4126_v52 }
 0x12f   :  { %2391 = vmatpush.bf16.msrb.mxu2 %v4117_v38  ;;  %2379 = vmatpush.bf16.msrb.mxu1 %v4108_v54  ;;  %v4130_v54 = vld [vmem:[%s4578_s11 + $0x10] sm:$0xff] }
 0x131   :  { %2367 = vmatpush.bf16.msrb.mxu0 %v4099_v29 }
 0x132   :  { %2404 = vmatpush.bf16.msrb.mxu3 %v4125_v55  ;;  %v4141_v55 = vld [vmem:[%s4580_s13 + $0x28] sm:$0xff] }
 0x133   :  { %2392 = vmatpush.bf16.msrb.mxu2 %v4116_v43  ;;  %2380 = vmatpush.bf16.msrb.mxu1 %v4107_v58 }
 0x135   :  { %2368 = vmatpush.bf16.msrb.mxu0 %v4098_v35 }
 0x136   :  { %2405 = vmatpush.bf16.msrb.mxu3 %v4124_v59  ;;  %v1346_v59 = vperm.slane %v4446_v63, 7 }
 0x137   :  { %2393 = vmatpush.bf16.msrb.mxu2 %v4115_v48  ;;  %2381 = vmatpush.bf16.msrb.mxu1 %v4106_v62  ;;  %v4129_v62 = vld [vmem:[%s4578_s11 + $0x8] sm:$0xff] }
 0x139   :  { %2369 = vmatpush.bf16.msrb.mxu0 %v4097_v42  ;;  %v1344_v42 = vperm.slane %v4446_v63, 5 }
 0x13a   :  { %2406 = vmatpush.bf16.msrb.mxu3 %v4123_v0  ;;  %v4140_v0 = vld [vmem:[%s4580_s13 + $0x20] sm:$0xff] }
 0x13b   :  { %2394 = vmatpush.bf16.msrb.mxu2 %v4114_v53  ;;  %2382 = vmatpush.bf16.msrb.mxu1 %v4105_v2 }
 0x13d   :  { %v1176_v15 = vpop.f32.mrf.mxu0  ;;  %2370 = vmatpush.bf16.msrb.mxu0 %v4096_v47  ;;  %v4142_v47 = vld [vmem:[%s4580_s13 + $0x30] sm:$0xff] }
 0x13e   :  { %v1177_v19 = vadd.f32 %v4164_v13, %v1176_v15  ;;  %2407 = vmatpush.bf16.msrb.mxu3 %v4122_v4 }
 0x13f   :  { %v1189_v22 = vpop.f32.mrf.mxu1  ;;  %2395 = vmatpush.bf16.msrb.mxu2 %v4113_v56  ;;  %2383 = vmatpush.bf16.msrb.mxu1 %v4104_v6  ;;  %v1345_v56 = vperm.slane %v4446_v63, 6 }
 0x140   :  { %v1190_v25 = vadd.f32 %v1189_v22, %v1177_v19 }
 0x142   :  { %2408 = vmatpush.bf16.msrb.mxu3 %v4121_v7 }
 0x143   :  { %2396 = vmatpush.bf16.msrb.mxu2 %v4112_v61 }
 0x145   :  { %v1178_v26 = vpop.f32.mrf.mxu0 }
 0x146   :  { %2409 = vmatpush.bf16.msrb.mxu3 %v4120_v12 }
 0x147   :  { %v1191_v31 = vpop.f32.mrf.mxu1 }
 0x149   :  { %v1202_v32 = vpop.f32.mrf.mxu2 }
 0x14a   :  { %v1203_v36 = vadd.f32 %v1202_v32, %v1190_v25  ;;  %v1342_v25 = vperm.slane %v4446_v63, 3  ;;  %v1343_v32 = vperm.slane %v4446_v63, 4 }
 0x14c   :  { %v1215_v37 = vpop.f32.mrf.mxu3 }
 0x14d   :  { %v4437_v40 = vadd.f32 %v1215_v37, %v1203_v36  ;;  %v4132_v36 = vld [vmem:[%s4578_s11 + $0x20] sm:$0xff]  ;;  %v4143_v37 = vld [vmem:[%s4580_s13 + $0x38] sm:$0xff] }
 0x151   :  { %v1204_v46 = vpop.f32.mrf.mxu2 }
 0x152   :  { %v4131_v46 = vld [vmem:[%s4578_s11 + $0x18] sm:$0xff] }
 0x154   :  { %v1217_v49 = vpop.f32.mrf.mxu3 }
 0x15d   :  { %v4439_v57 = vpop.f32.mrf.mxu0 }
 0x15e   :  { %v1229_v63 = vadd.f32 %v4439_v57, %v4437_v40  ;;  %v2416_v40 = vld [vmem:[%s4594_s24] sm:$0x1] }
 0x15f   :  { %v4441_v60 = vpop.f32.mrf.mxu1 }
 0x165   :  { %v1230_v1 = vpop.f32.mrf.mxu0 }
 0x167   :  { %v1243_v5 = vpop.f32.mrf.mxu1 }
 0x169   :  { %v4448_v8 = vpop.f32.mrf.mxu2 }
 0x16c   :  { %v4450_v9 = vpop.f32.mrf.mxu3 }
 0x16d   :  { %v1684_v10 = vpop.f32.mrf.mxu0 }
 0x16e   :  { %v1685_v13 = vadd.f32 %v1684_v10, %v1339_v3  ;;  %v4128_v3 = vld [vmem:[%s4578_s11] sm:$0xff] }
 0x16f   :  { %v1697_v15 = vpop.f32.mrf.mxu1 }
 0x170   :  { %v1779_v14 = vmax.f32 %v1685_v13, 0.0  ;;  %v1698_v16 = vadd.f32 %v1697_v15, %v1340_v11  ;;  %v4139_v11 = vld [vmem:[%s4580_s13 + $0x18] sm:$0xff]  ;;  %v1242_v13 = vadd.f32 %v4441_v60, %v1229_v63  ;;  %v4138_v15 = vld [vmem:[%s4580_s13 + $0x10] sm:$0xff]  ;;  %v4137_v60 = vld [vmem:[%s4580_s13 + $0x8] sm:$0xff] }
 0x171   :  { %v1256_v19 = vpop.f32.mrf.mxu2 }
 0x172   :  { %v1787_v18 = vpack.c.bf16 %v1779_v14, %v1779_v14  ;;  %v1780_v50 = vmax.f32 %v1698_v16, 0.0  ;;  %v1255_v16 = vadd.f32 %v4448_v8, %v1242_v13  ;;  %v4151_v8 = vld [vmem:[%s4581_s14 + $0x38] sm:$0xff]  ;;  %v4168_v13 = vld [vmem:[%s4584_s17] ss:$0 sm:$0xff] }
 0x174   :  { %v1269_v20 = vpop.f32.mrf.mxu3  ;;  %2319 = vmatmul.bf16.vlgmr.msra.gmra.mxu0 %v1787_v18  ;;  %v1788_v21 = vpack.c.bf16 %v1780_v50, %v1780_v50  ;;  %v4136_v18 = vld [vmem:[%s4580_s13] sm:$0xff]  ;;  %v4150_v50 = vld [vmem:[%s4581_s14 + $0x30] sm:$0xff] }
 0x175   :  { %v1686_v22 = vpop.f32.mrf.mxu0  ;;  %2485 = vmatpush.bf16.msra.mxu0 %v4135_v17  ;;  %v1268_v17 = vadd.f32 %v4450_v9, %v1255_v16  ;;  %v4149_v9 = vld [vmem:[%s4581_s14 + $0x28] sm:$0xff] }
 0x176   :  { %2332 = vmatmul.bf16.vlgmr.msra.gmra.mxu1 %v1788_v21  ;;  %v4155_v21 = vld [vmem:[%s4582_s15 + $0x18] sm:$0xff]  ;;  %v4148_v22 = vld [vmem:[%s4581_s14 + $0x20] sm:$0xff] }
 0x177   :  { %v1699_v26 = vpop.f32.mrf.mxu1  ;;  %v1271_v19 = vmax.f32 %v1268_v17, 0.0  ;;  %2581 = vmatpush.bf16.msra.mxu1 %v4151_v8 }
 0x179   :  { %2486 = vmatpush.bf16.msra.mxu0 %v4134_v23  ;;  %v1710_v28 = vpop.f32.mrf.mxu2  ;;  %v2499_v20 = vpack.c.bf16 %v1271_v19, %v1271_v19  ;;  %v4154_v23 = vld [vmem:[%s4582_s15 + $0x10] sm:$0xff] }
 0x17a   :  { %v1711_v30 = vadd.f32 %v1710_v28, %v1341_v24  ;;  %v4147_v24 = vld [vmem:[%s4581_s14 + $0x18] sm:$0xff] }
 0x17b   :  { %2582 = vmatpush.bf16.msra.mxu1 %v4150_v50 }
 0x17c   :  { %v1723_v29 = vpop.f32.mrf.mxu3  ;;  %v1781_v33 = vmax.f32 %v1711_v30, 0.0  ;;  %v4145_v30 = vld [vmem:[%s4581_s14 + $0x8] sm:$0xff] }
 0x17d   :  { %v1724_v31 = vadd.f32 %v1723_v29, %v1342_v25  ;;  %2487 = vmatpush.bf16.msra.mxu0 %v4133_v27  ;;  %v1736_v35 = vpop.f32.mrf.mxu0  ;;  %v4153_v25 = vld [vmem:[%s4582_s15 + $0x8] sm:$0xff]  ;;  %v4146_v27 = vld [vmem:[%s4581_s14 + $0x10] sm:$0xff]  ;;  %v4152_v29 = vld [vmem:[%s4582_s15] sm:$0xff] }
 0x17e   :  { %v1789_v38 = vpack.c.bf16 %v1781_v33, %v1781_v33  ;;  %v1737_v41 = vadd.f32 %v1736_v35, %v1343_v32  ;;  %v4144_v32 = vld [vmem:[%s4581_s14] sm:$0xff] }
 0x17f   :  { %v1782_v34 = vmax.f32 %v1724_v31, 0.0  ;;  %v1749_v49 = vpop.f32.mrf.mxu1  ;;  %2583 = vmatpush.bf16.msra.mxu1 %v4149_v9 }
 0x180   :  { %v1783_v43 = vmax.f32 %v1737_v41, 0.0  ;;  %2345 = vmatmul.bf16.vlgmr.msra.gmra.mxu2 %v1789_v38  ;;  %v1750_v51 = vadd.f32 %v1749_v49, %v1344_v42 }
 0x181   :  { %v1790_v39 = vpack.c.bf16 %v1782_v34, %v1782_v34  ;;  %v1712_v44 = vpop.f32.mrf.mxu2  ;;  %2488 = vmatpush.bf16.msra.mxu0 %v4132_v36  ;;  %2642 = vmatpush.bf16.msra.mxu2 %v4143_v37  ;;  %v4165_v34 = vld [vmem:[%s4577_s10] ss:$0 sm:$0xff] }
 0x182   :  { %v1791_v48 = vpack.c.bf16 %v1783_v43, %v1783_v43  ;;  %v1784_v53 = vmax.f32 %v1750_v51, 0.0 }
 0x183   :  { %2358 = vmatmul.bf16.vlgmr.msra.gmra.mxu3 %v1790_v39  ;;  %2584 = vmatpush.bf16.msra.mxu1 %v4148_v22 }
 0x184   :  { %v1725_v45 = vpop.f32.mrf.mxu3  ;;  %2371 = vmatmul.bf16.vlgmr.msrb.gmra.mxu0 %v1791_v48  ;;  %v1792_v58 = vpack.c.bf16 %v1784_v53, %v1784_v53  ;;  %2696 = vmatpush.bf16.msra.mxu3 %v4155_v21  ;;  %v4166_v48 = vld [vmem:[%s4579_s12] ss:$0 sm:$0xff] }
 0x185   :  { %v1738_v52 = vpop.f32.mrf.mxu0  ;;  %2489 = vmatpush.bf16.msra.mxu0 %v4131_v46  ;;  %2643 = vmatpush.bf16.msra.mxu2 %v4142_v47 }
 0x186   :  { %2384 = vmatmul.bf16.vlgmr.msrb.gmra.mxu1 %v1792_v58 }
 0x187   :  { %v1751_v4 = vpop.f32.mrf.mxu1  ;;  %2585 = vmatpush.bf16.msra.mxu1 %v4147_v24 }
 0x188   :  { %2697 = vmatpush.bf16.msra.mxu3 %v4154_v23 }
 0x189   :  { %v1762_v61 = vpop.f32.mrf.mxu2  ;;  %2490 = vmatpush.bf16.msra.mxu0 %v4130_v54  ;;  %2644 = vmatpush.bf16.msra.mxu2 %v4141_v55 }
 0x18a   :  { %v1763_v1 = vadd.f32 %v1762_v61, %v1345_v56 }
 0x18b   :  { %2586 = vmatpush.bf16.msra.mxu1 %v4146_v27 }
 0x18c   :  { %v1775_v2 = vpop.f32.mrf.mxu3  ;;  %v1785_v6 = vmax.f32 %v1763_v1, 0.0  ;;  %2698 = vmatpush.bf16.msra.mxu3 %v4153_v25 }
 0x18d   :  { %v1776_v5 = vadd.f32 %v1775_v2, %v1346_v59  ;;  %2491 = vmatpush.bf16.msra.mxu0 %v4129_v62  ;;  %2645 = vmatpush.bf16.msra.mxu2 %v4140_v0 }
 0x18e   :  { %v1793_v10 = vpack.c.bf16 %v1785_v6, %v1785_v6 }
 0x18f   :  { %v1786_v7 = vmax.f32 %v1776_v5, 0.0  ;;  %2587 = vmatpush.bf16.msra.mxu1 %v4145_v30 }
 0x190   :  { %2397 = vmatmul.bf16.vlgmr.msrb.gmra.mxu2 %v1793_v10  ;;  %2699 = vmatpush.bf16.msra.mxu3 %v4152_v29 }
 0x191   :  { %v1794_v12 = vpack.c.bf16 %v1786_v7, %v1786_v7  ;;  %v1764_v14 = vpop.f32.mrf.mxu2  ;;  %2492 = vmatpush.bf16.msra.mxu0 %v4128_v3  ;;  %2646 = vmatpush.bf16.msra.mxu2 %v4139_v11  ;;  %v4167_v3 = vld [vmem:[%s4583_s16] ss:$0 sm:$0xff] }
 0x193   :  { %2410 = vmatmul.bf16.vlgmr.msrb.gmra.mxu3 %v1794_v12  ;;  %2588 = vmatpush.bf16.msra.mxu1 %v4144_v32 }
 0x194   :  { %v1777_v57 = vpop.f32.mrf.mxu3  ;;  %2493 = vmatmul.bf16.vlgmr.msra.gmra.mxu0 %v2416_v40 }
 0x195   :  { %2647 = vmatpush.bf16.msra.mxu2 %v4138_v15 }
 0x199   :  { %2648 = vmatpush.bf16.msra.mxu2 %v4137_v60  ;;  %v4169_v60 = vld [vmem:[#allocation2] ss:$0 sm:$0xff] }
 0x19d   :  { %2649 = vmatpush.bf16.msra.mxu2 %v4136_v18 }
 0x1a0   :  { %2650 = vmatmul.bf16.vlgmr.msra.gmra.mxu2 %v2499_v20 }
 0x1f1   :  { %v2320_v26 = vpop.f32.mrf.mxu0 }
 0x1f2   :  { %v2321_v35 = vadd.f32 %v4165_v34, %v2320_v26 }
 0x1f3   :  { %v2333_v28 = vpop.f32.mrf.mxu1 }
 0x1f4   :  { %v2334_v39 = vadd.f32 %v2333_v28, %v2321_v35 }
 0x1f9   :  { %v2322_v31 = vpop.f32.mrf.mxu0 }
 0x1fb   :  { %v2335_v33 = vpop.f32.mrf.mxu1 }
 0x201   :  { %v2372_v36 = vpop.f32.mrf.mxu0 }
 0x203   :  { %v2346_v37 = vpop.f32.mrf.mxu2  ;;  %v2385_v42 = vpop.f32.mrf.mxu1 }
 0x204   :  { %v2347_v41 = vadd.f32 %v2346_v37, %v2334_v39 }
 0x206   :  { %v2359_v38 = vpop.f32.mrf.mxu3 }
 0x207   :  { %v2360_v44 = vadd.f32 %v2359_v38, %v2347_v41 }
 0x209   :  { %v2374_v43 = vpop.f32.mrf.mxu0  ;;  %v2373_v47 = vadd.f32 %v2372_v36, %v2360_v44 }
 0x20b   :  { %v2348_v45 = vpop.f32.mrf.mxu2  ;;  %v2387_v49 = vpop.f32.mrf.mxu1  ;;  %v2386_v52 = vadd.f32 %v2385_v42, %v2373_v47 }
 0x20e   :  { %v2361_v46 = vpop.f32.mrf.mxu3 }
 0x211   :  { %v2494_v51 = vpop.f32.mrf.mxu0 }
 0x212   :  { %v2495_v53 = vadd.f32 %v4166_v48, %v2494_v51 }
 0x213   :  { %v2398_v54 = vpop.f32.mrf.mxu2 }
 0x214   :  { %v2498_v55 = vmax.f32 %v2495_v53, 0.0  ;;  %v2399_v56 = vadd.f32 %v2398_v54, %v2386_v52 }
 0x216   :  { %v2411_v58 = vpop.f32.mrf.mxu3  ;;  %v2655_v59 = vpack.c.bf16 %v2498_v55, %v2498_v55 }
 0x217   :  { %v2412_v61 = vadd.f32 %v2411_v58, %v2399_v56 }
 0x218   :  { %3871 = vmatmul.msk.bf16.vlgmr.msra.gmra.mxu3 %vm2688_vm0, %v2655_v59 }
 0x219   :  { %v2415_v62 = vmax.f32 %v2412_v61, 0.0  ;;  %v2496_v0 = vpop.f32.mrf.mxu0 }
 0x21b   :  { %v2516_v1 = vpack.c.bf16 %v2415_v62, %v2415_v62  ;;  %v2400_v2 = vpop.f32.mrf.mxu2 }
 0x21d   :  { %2589 = vmatmul.bf16.vlgmr.msra.gmra.mxu1 %v2516_v1 }
 0x21e   :  { %v2413_v4 = vpop.f32.mrf.mxu3 }
 0x223   :  { %v2651_v5 = vpop.f32.mrf.mxu2 }
 0x22b   :  { %v2653_v6 = vpop.f32.mrf.mxu2 }
 0x29a   :  { %v2590_v63 = vpop.f32.mrf.mxu1 }
 0x29b   :  { %v2652_v7 = vadd.f32 %v2651_v5, %v2590_v63  ;;  %v2701_v10 = vpop.f32.mrf.mxu3 }
 0x29d   :  { %v2705_v11 = vadd.f32 %v2701_v10, %v2652_v7 }
 0x29f   :  { %v2710_v12 = vadd.f32 %v4167_v3, %v2705_v11 }
 0x2a1   :  { %v2711_v14 = vmax.f32 %v2710_v12, 0.0 }
 0x2a2   :  { %v2592_v40 = vpop.f32.mrf.mxu1 }
 0x2a3   :  { %v2716_v57 = vmul.f32 %v4168_v13, %v2711_v14  ;;  %v2703_v15 = vpop.f32.mrf.mxu3 }
 0x2a5   :  { %v2718_v16 = vsel %vm2717_vm1, %v2716_v57, 0.0 }
 0x2a6   :  { %2719 = vadd.xlane.f32.xlu0 %v2718_v16 }
 0x319   :  { %v2720_v17 = vpop.xlane.xlu0 %2719 }
 0x31a   :  { %v2725_v18 = vadd.f32 %v4169_v60, %v2720_v17 }
 0x31c   :  { %2727 = vst.msk [vmem:[%s4586_s19] sm:$0x3] %vm2726_vm2, %v2725_v18 }
 0x31d   :  { %2732 = vsyncpa [#allocation4], 1 }
 0x31e   :  { %2733 = vsyncpa [#allocation6], 1 }
 0x31f   :  { %2734 = vsyncpa [#allocation9], 1 }

</bundles_post_ra>
